<compile_context>
chip_gen: v6e
topology: v6e:2x2x1
jax: 0.10.0
libtpu: 0.0.40
codegen_flags: <defaults>
</compile_context>

<pallas_src>
import math
import functools

import jax
import jax.numpy as jnp
from jax.experimental import pallas as pl
from jax.experimental.pallas import tpu as pltpu


# ---------------------------------------------------------------------------
# In-kernel helpers (traced inside the Pallas kernel body)
# ---------------------------------------------------------------------------

def _mxu(a, b):
    """MXU matmul: bf16 inputs, f32 accumulation."""
    return jnp.dot(a.astype(jnp.bfloat16), b.astype(jnp.bfloat16),
                   preferred_element_type=jnp.float32)


def _layer_norm(y, g, b, eps=1e-5):
    """f32 LayerNorm over the last dim (matches nn.LayerNorm defaults)."""
    mean = jnp.mean(y, axis=-1, keepdims=True)
    var = jnp.mean((y - mean) ** 2, axis=-1, keepdims=True)
    return (y - mean) * jax.lax.rsqrt(var + eps) * g + b


def _mha_heads(q, k, v, mask, n_heads):
    """Scaled dot-product attention, heads as static slices of the D axis.

    q: [Tq, D], k/v: [Tk, D], mask: [Tq, Tk] int32 (nonzero = masked).
    Returns [Tq, D] (heads concatenated -> lane-dense single write upstream).
    """
    tq, d_model = q.shape
    dk = d_model // n_heads
    scale = jnp.float32(1.0 / math.sqrt(dk))
    masked = mask != 0
    outs = []
    for h in range(n_heads):                      # static unroll (H is small)
        lo, hi = h * dk, (h + 1) * dk
        qh = q[:, lo:hi]
        kh = k[:, lo:hi]
        vh = v[:, lo:hi]
        s = jax.lax.dot_general(
            qh.astype(jnp.bfloat16), kh.astype(jnp.bfloat16),
            dimension_numbers=(((1,), (1,)), ((), ())),
            preferred_element_type=jnp.float32) * scale
        s = jnp.where(masked, jnp.float32(-1e9), s)
        s = s - jnp.max(s, axis=-1, keepdims=True)
        p = jnp.exp(s)                                       # f32 on VPU/EUP
        p = p * pl.reciprocal(jnp.sum(p, axis=-1, keepdims=True), approx=True)
        outs.append(_mxu(p, vh))                             # [Tq, dk]
    return jnp.concatenate(outs, axis=-1)                    # [Tq, D]


# ---------------------------------------------------------------------------
# Fused DecodeLayer kernel (one grid step = one batch element)
# ---------------------------------------------------------------------------

def _decode_layer_kernel(dec_ref, enc_ref, smask_ref, emask_ref,
                         wqkv_s_ref, wo_s_ref, g_s_ref, b_s_ref,
                         wq_x_ref, wkv_x_ref, wo_x_ref, g_x_ref, b_x_ref,
                         w1_ref, w2_ref, g_f_ref, b_f_ref,
                         out_ref, *, n_heads):
    x = dec_ref[0]            # [T, D]  f32
    enc = enc_ref[0]          # [S, D]  f32
    smask = smask_ref[0]      # [T, T]  int32
    emask = emask_ref[0]      # [T, S]  int32
    d_model = x.shape[-1]

    # ---- masked self-attention  (+ residual + LayerNorm epilogue) ----
    qkv = _mxu(x, wqkv_s_ref[...])                            # [T, 3D]
    ctx = _mha_heads(qkv[:, :d_model],
                     qkv[:, d_model:2 * d_model],
                     qkv[:, 2 * d_model:],
                     smask, n_heads)                          # [T, D]
    y1 = _layer_norm(_mxu(ctx, wo_s_ref[...]) + x,
                     g_s_ref[...], b_s_ref[...])

    # ---- encoder-decoder attention  (+ residual + LayerNorm epilogue) ----
    q2 = _mxu(y1, wq_x_ref[...])                              # [T, D]
    kv = _mxu(enc, wkv_x_ref[...])                            # [S, 2D]
    ctx2 = _mha_heads(q2, kv[:, :d_model], kv[:, d_model:], emask, n_heads)
    y2 = _layer_norm(_mxu(ctx2, wo_x_ref[...]) + y1,
                     g_x_ref[...], b_x_ref[...])

    # ---- position-wise FFN  (+ residual + LayerNorm epilogue) ----
    h = jnp.maximum(_mxu(y2, w1_ref[...]), 0.0)               # ReLU
    y3 = _layer_norm(_mxu(h, w2_ref[...]) + y2,
                     g_f_ref[...], b_f_ref[...])

    out_ref[0] = y3


def decode_layer_forward(params, dec_inputs, enc_outputs,
                         dec_self_attn_mask, dec_enc_attn_mask):
    """dec_inputs: [B,T,D], enc_outputs: [B,S,D], masks bool [B,T,T]/[B,T,S]."""
    B, T, D = dec_inputs.shape
    S = enc_outputs.shape[1]
    d_ff = params["ffn_w1"].shape[1]
    n_heads = params["n_heads"]

    smask = dec_self_attn_mask.astype(jnp.int32)
    emask = dec_enc_attn_mask.astype(jnp.int32)

    kernel = functools.partial(_decode_layer_kernel, n_heads=n_heads)

    def batch_spec(t, d):
        return pl.BlockSpec((1, t, d), lambda b: (b, 0, 0))

    def whole_spec(shape):
        nd = len(shape)
        return pl.BlockSpec(shape, lambda b, _nd=nd: (0,) * _nd)

    in_specs = [
        batch_spec(T, D),                        # dec_inputs
        batch_spec(S, D),                        # enc_outputs
        batch_spec(T, T),                        # dec self-attn mask
        batch_spec(T, S),                        # dec-enc attn mask
        whole_spec((D, 3 * D)),                  # W_QKV (self)
        whole_spec((D, D)),                      # W_O   (self)
        whole_spec((1, D)), whole_spec((1, D)),  # LN gamma/beta (self)
        whole_spec((D, D)),                      # W_Q   (cross)
        whole_spec((D, 2 * D)),                  # W_KV  (cross)
        whole_spec((D, D)),                      # W_O   (cross)
        whole_spec((1, D)), whole_spec((1, D)),  # LN gamma/beta (cross)
        whole_spec((D, d_ff)),                   # FFN w1
        whole_spec((d_ff, D)),                   # FFN w2
        whole_spec((1, D)), whole_spec((1, D)),  # LN gamma/beta (ffn)
    ]

    return pl.pallas_call(
        kernel,
        out_shape=jax.ShapeDtypeStruct((B, T, D), jnp.float32),
        grid=(B,),
        in_specs=in_specs,
        out_specs=pl.BlockSpec((1, T, D), lambda b: (b, 0, 0)),
        compiler_params=pltpu.CompilerParams(
            dimension_semantics=("parallel",)),   # megacore-shardable on v7x
    )(dec_inputs, enc_outputs, smask, emask,
      params["wqkv_s"], params["wo_s"], params["g_s"], params["b_s"],
      params["wq_x"], params["wkv_x"], params["wo_x"], params["g_x"],
      params["b_x"],
      params["ffn_w1"], params["ffn_w2"], params["g_f"], params["b_f"])


# ---------------------------------------------------------------------------
# Deterministic parameter init (PyTorch nn.Linear(bias=False) style, stored
# transposed as [in, out] so y = x @ W inside the kernel)
# ---------------------------------------------------------------------------

def _linear_t(key, fan_in, fan_out):
    bound = 1.0 / math.sqrt(fan_in)
    return jax.random.uniform(key, (fan_in, fan_out), jnp.float32, -bound, bound)


def init_decode_layer(key, d_model, n_heads, d_ff):
    ks = jax.random.split(key, 10)
    return {
        "n_heads": n_heads,
        "wqkv_s": jnp.concatenate([_linear_t(ks[0], d_model, d_model),
                                   _linear_t(ks[1], d_model, d_model),
                                   _linear_t(ks[2], d_model, d_model)], axis=1),
        "wo_s": _linear_t(ks[3], d_model, d_model),
        "g_s": jnp.ones((1, d_model), jnp.float32),
        "b_s": jnp.zeros((1, d_model), jnp.float32),
        "wq_x": _linear_t(ks[4], d_model, d_model),
        "wkv_x": jnp.concatenate([_linear_t(ks[5], d_model, d_model),
                                  _linear_t(ks[6], d_model, d_model)], axis=1),
        "wo_x": _linear_t(ks[7], d_model, d_model),
        "g_x": jnp.ones((1, d_model), jnp.float32),
        "b_x": jnp.zeros((1, d_model), jnp.float32),
        "ffn_w1": _linear_t(ks[8], d_model, d_ff),
        "ffn_w2": _linear_t(ks[9], d_ff, d_model),
        "g_f": jnp.ones((1, d_model), jnp.float32),
        "b_f": jnp.zeros((1, d_model), jnp.float32),
    }


# ---------------------------------------------------------------------------
# Pure-JAX f32 reference (mirrors the PyTorch module) for a sanity check
# ---------------------------------------------------------------------------

def _ref_ln(y, g, b, eps=1e-5):
    m = y.mean(-1, keepdims=True)
    v = ((y - m) ** 2).mean(-1, keepdims=True)
    return (y - m) / jnp.sqrt(v + eps) * g + b


def _ref_mha(x_q, x_kv, wq, wk, wv, wo, g, b, mask, n_heads):
    B, Tq, D = x_q.shape
    Tk = x_kv.shape[1]
    dk = D // n_heads
    Q = (x_q @ wq).reshape(B, Tq, n_heads, dk).transpose(0, 2, 1, 3)
    K = (x_kv @ wk).reshape(B, Tk, n_heads, dk).transpose(0, 2, 1, 3)
    V = (x_kv @ wv).reshape(B, Tk, n_heads, dk).transpose(0, 2, 1, 3)
    s = jnp.einsum("bhqd,bhkd->bhqk", Q, K) / math.sqrt(dk)
    s = jnp.where(mask[:, None].astype(bool), jnp.float32(-1e9), s)
    a = jax.nn.softmax(s, axis=-1)
    ctx = jnp.einsum("bhqk,bhkd->bhqd", a, V).transpose(0, 2, 1, 3)
    ctx = ctx.reshape(B, Tq, D)
    return _ref_ln(ctx @ wo + x_q, g, b)


def decode_layer_reference(params, dec, enc, smask, emask):
    D = dec.shape[-1]
    H = params["n_heads"]
    wqkv = params["wqkv_s"]
    y1 = _ref_mha(dec, dec, wqkv[:, :D], wqkv[:, D:2 * D], wqkv[:, 2 * D:],
                  params["wo_s"], params["g_s"], params["b_s"], smask, H)
    wkv = params["wkv_x"]
    y2 = _ref_mha(y1, enc, params["wq_x"], wkv[:, :D], wkv[:, D:],
                  params["wo_x"], params["g_x"], params["b_x"], emask, H)
    h = jnp.maximum(y2 @ params["ffn_w1"], 0.0)
    return _ref_ln(h @ params["ffn_w2"] + y2, params["g_f"], params["b_f"])


# ---------------------------------------------------------------------------
# Main
# ---------------------------------------------------------------------------

if __name__ == "__main__":
    B, T, S = 2, 8, 8
    D_MODEL, N_HEADS, D_FF = 32, 4, 64

    key = jax.random.PRNGKey(0)
    k_p, k_dec, k_enc, k_dt, k_et = jax.random.split(key, 5)

    params = init_decode_layer(k_p, D_MODEL, N_HEADS, D_FF)

    dec_inputs = jax.random.normal(k_dec, (B, T, D_MODEL), jnp.float32)
    enc_outputs = jax.random.normal(k_enc, (B, S, D_MODEL), jnp.float32)

    # Token sequences with trailing padding -> attention masks (True = masked)
    dec_tokens = jax.random.randint(k_dt, (B, T), 1, 13, jnp.int32)
    dec_tokens = dec_tokens.at[:, -1:].set(0)
    enc_tokens = jax.random.randint(k_et, (B, S), 1, 11, jnp.int32)
    enc_tokens = enc_tokens.at[:, -2:].set(0)

    dec_pad = jnp.broadcast_to((dec_tokens == 0)[:, None, :], (B, T, T))
    causal = jnp.triu(jnp.ones((T, T), jnp.int32), k=1).astype(bool)
    dec_self_attn_mask = dec_pad | jnp.broadcast_to(causal[None], (B, T, T))
    dec_enc_attn_mask = jnp.broadcast_to((enc_tokens == 0)[:, None, :],
                                         (B, T, S))

    fwd = jax.jit(functools.partial(decode_layer_forward, params))
    out = fwd(dec_inputs, enc_outputs, dec_self_attn_mask, dec_enc_attn_mask)
    jax.block_until_ready(out)

    ref = decode_layer_reference(params, dec_inputs, enc_outputs,
                                 dec_self_attn_mask, dec_enc_attn_mask)

    assert out.shape == (B, T, D_MODEL)
    assert bool(jnp.all(jnp.isfinite(out)))
    # bf16 MXU inputs + approx reciprocal vs. f32 reference -> loose tolerance
    assert float(jnp.max(jnp.abs(out - ref))) < 0.1
    print("KERNEL_OK")
</pallas_src>

<mosaic_0001>
module attributes {stable_mosaic.version = 11 : i64} {
  func.func @_decode_layer_kernel(%arg0: i32, %arg1: memref<1x8x32xf32, #tpu.memory_space<vmem>>, %arg2: memref<1x8x32xf32, #tpu.memory_space<vmem>>, %arg3: memref<1x8x8xi32, #tpu.memory_space<vmem>>, %arg4: memref<1x8x8xi32, #tpu.memory_space<vmem>>, %arg5: memref<32x96xf32, #tpu.memory_space<vmem>>, %arg6: memref<32x32xf32, #tpu.memory_space<vmem>>, %arg7: memref<1x32xf32, #tpu.memory_space<vmem>>, %arg8: memref<1x32xf32, #tpu.memory_space<vmem>>, %arg9: memref<32x32xf32, #tpu.memory_space<vmem>>, %arg10: memref<32x64xf32, #tpu.memory_space<vmem>>, %arg11: memref<32x32xf32, #tpu.memory_space<vmem>>, %arg12: memref<1x32xf32, #tpu.memory_space<vmem>>, %arg13: memref<1x32xf32, #tpu.memory_space<vmem>>, %arg14: memref<32x64xf32, #tpu.memory_space<vmem>>, %arg15: memref<64x32xf32, #tpu.memory_space<vmem>>, %arg16: memref<1x32xf32, #tpu.memory_space<vmem>>, %arg17: memref<1x32xf32, #tpu.memory_space<vmem>>, %arg18: memref<1x8x32xf32, #tpu.memory_space<vmem>>) attributes {dimension_semantics = [#tpu.dimension_semantics<parallel>], iteration_bounds = array<i64: 2>, scalar_prefetch = 0 : i64, scratch_operands = 0 : i64, tpu.core_type = #tpu.core_type<tc>, window_params = [{transform_indices = @transform_0, window_bounds = array<i64: 1, 8, 32>}, {transform_indices = @transform_1, window_bounds = array<i64: 1, 8, 32>}, {transform_indices = @transform_2, window_bounds = array<i64: 1, 8, 8>}, {transform_indices = @transform_3, window_bounds = array<i64: 1, 8, 8>}, {pipeline_mode = #tpu.pipeline_mode<synchronous>, transform_indices = @transform_4, window_bounds = array<i64: 32, 96>}, {pipeline_mode = #tpu.pipeline_mode<synchronous>, transform_indices = @transform_5, window_bounds = array<i64: 32, 32>}, {pipeline_mode = #tpu.pipeline_mode<synchronous>, transform_indices = @transform_6, window_bounds = array<i64: 1, 32>}, {pipeline_mode = #tpu.pipeline_mode<synchronous>, transform_indices = @transform_7, window_bounds = array<i64: 1, 32>}, {pipeline_mode = #tpu.pipeline_mode<synchronous>, transform_indices = @transform_8, window_bounds = array<i64: 32, 32>}, {pipeline_mode = #tpu.pipeline_mode<synchronous>, transform_indices = @transform_9, window_bounds = array<i64: 32, 64>}, {pipeline_mode = #tpu.pipeline_mode<synchronous>, transform_indices = @transform_10, window_bounds = array<i64: 32, 32>}, {pipeline_mode = #tpu.pipeline_mode<synchronous>, transform_indices = @transform_11, window_bounds = array<i64: 1, 32>}, {pipeline_mode = #tpu.pipeline_mode<synchronous>, transform_indices = @transform_12, window_bounds = array<i64: 1, 32>}, {pipeline_mode = #tpu.pipeline_mode<synchronous>, transform_indices = @transform_13, window_bounds = array<i64: 32, 64>}, {pipeline_mode = #tpu.pipeline_mode<synchronous>, transform_indices = @transform_14, window_bounds = array<i64: 64, 32>}, {pipeline_mode = #tpu.pipeline_mode<synchronous>, transform_indices = @transform_15, window_bounds = array<i64: 1, 32>}, {pipeline_mode = #tpu.pipeline_mode<synchronous>, transform_indices = @transform_16, window_bounds = array<i64: 1, 32>}, {transform_indices = @transform_17, window_bounds = array<i64: 1, 8, 32>}]} {
    %c0 = arith.constant 0 : index
    %c0_0 = arith.constant 0 : index
    %c0_1 = arith.constant 0 : index
    %0 = vector.load %arg1[%c0, %c0_0, %c0_1] : memref<1x8x32xf32, #tpu.memory_space<vmem>>, vector<1x8x32xf32>
    %1 = vector.shape_cast %0 : vector<1x8x32xf32> to vector<8x32xf32>
    %c0_2 = arith.constant 0 : index
    %c0_3 = arith.constant 0 : index
    %c0_4 = arith.constant 0 : index
    %2 = vector.load %arg2[%c0_2, %c0_3, %c0_4] : memref<1x8x32xf32, #tpu.memory_space<vmem>>, vector<1x8x32xf32>
    %3 = vector.shape_cast %2 : vector<1x8x32xf32> to vector<8x32xf32>
    %c0_5 = arith.constant 0 : index
    %c0_6 = arith.constant 0 : index
    %c0_7 = arith.constant 0 : index
    %4 = vector.load %arg3[%c0_5, %c0_6, %c0_7] : memref<1x8x8xi32, #tpu.memory_space<vmem>>, vector<1x8x8xi32>
    %5 = vector.shape_cast %4 : vector<1x8x8xi32> to vector<8x8xi32>
    %c0_8 = arith.constant 0 : index
    %c0_9 = arith.constant 0 : index
    %c0_10 = arith.constant 0 : index
    %6 = vector.load %arg4[%c0_8, %c0_9, %c0_10] : memref<1x8x8xi32, #tpu.memory_space<vmem>>, vector<1x8x8xi32>
    %7 = vector.shape_cast %6 : vector<1x8x8xi32> to vector<8x8xi32>
    %c0_11 = arith.constant 0 : index
    %c0_12 = arith.constant 0 : index
    %8 = vector.load %arg5[%c0_11, %c0_12] : memref<32x96xf32, #tpu.memory_space<vmem>>, vector<32x96xf32>
    %9 = arith.truncf %1 : vector<8x32xf32> to vector<8x32xbf16>
    %10 = arith.truncf %8 : vector<32x96xf32> to vector<32x96xbf16>
    %cst = arith.constant dense<0.000000e+00> : vector<8x96xf32>
    %11 = tpu.matmul %9, %10, %cst {dimension_numbers = #tpu.dot_dimension_numbers<[1], [0], [0], [1], [0, 0, 1, 1], [], []>} : vector<8x32xbf16>, vector<32x96xbf16>, vector<8x96xf32> -> vector<8x96xf32>
    %12 = vector.extract_strided_slice %11 {offsets = [0, 0], sizes = [8, 32], strides = [1, 1]} : vector<8x96xf32> to vector<8x32xf32>
    %13 = vector.extract_strided_slice %11 {offsets = [0, 32], sizes = [8, 32], strides = [1, 1]} : vector<8x96xf32> to vector<8x32xf32>
    %14 = vector.extract_strided_slice %11 {offsets = [0, 64], sizes = [8, 32], strides = [1, 1]} : vector<8x96xf32> to vector<8x32xf32>
    %c0_i32 = arith.constant 0 : i32
    %15 = vector.broadcast %c0_i32 : i32 to vector<8x8xi32>
    %16 = arith.cmpi ne, %5, %15 : vector<8x8xi32>
    %17 = vector.extract_strided_slice %12 {offsets = [0, 0], sizes = [8, 8], strides = [1, 1]} : vector<8x32xf32> to vector<8x8xf32>
    %18 = vector.extract_strided_slice %13 {offsets = [0, 0], sizes = [8, 8], strides = [1, 1]} : vector<8x32xf32> to vector<8x8xf32>
    %19 = vector.extract_strided_slice %14 {offsets = [0, 0], sizes = [8, 8], strides = [1, 1]} : vector<8x32xf32> to vector<8x8xf32>
    %20 = arith.truncf %17 : vector<8x8xf32> to vector<8x8xbf16>
    %21 = arith.truncf %18 : vector<8x8xf32> to vector<8x8xbf16>
    %cst_13 = arith.constant dense<0.000000e+00> : vector<8x8xf32>
    %22 = tpu.matmul %20, %21, %cst_13 {dimension_numbers = #tpu.dot_dimension_numbers<[1], [1], [0], [0], [0, 0, 1, 0], [], []>} : vector<8x8xbf16>, vector<8x8xbf16>, vector<8x8xf32> -> vector<8x8xf32>
    %cst_14 = arith.constant 0.353553385 : f32
    %23 = vector.broadcast %cst_14 : f32 to vector<8x8xf32>
    %24 = arith.mulf %22, %23 : vector<8x8xf32>
    %cst_15 = arith.constant -1.000000e+09 : f32
    %25 = vector.broadcast %cst_15 : f32 to vector<8x8xf32>
    %26 = arith.select %16, %25, %24 : vector<8x8xi1>, vector<8x8xf32>
    %cst_16 = arith.constant dense<0xFF800000> : vector<8xf32>
    %27 = vector.multi_reduction <maximumf>, %26, %cst_16 [1] : vector<8x8xf32> to vector<8xf32>
    %28 = vector.shape_cast %27 : vector<8xf32> to vector<8x1xf32>
    %29 = vector.broadcast %28 : vector<8x1xf32> to vector<8x8xf32>
    %30 = arith.subf %26, %29 : vector<8x8xf32>
    %31 = math.exp %30 : vector<8x8xf32>
    %cst_17 = arith.constant dense<0.000000e+00> : vector<8xf32>
    %32 = vector.multi_reduction <add>, %31, %cst_17 [1] : vector<8x8xf32> to vector<8xf32>
    %33 = vector.shape_cast %32 : vector<8xf32> to vector<8x1xf32>
    %34 = tpu.reciprocal %33 {approx = true} : vector<8x1xf32> -> vector<8x1xf32>
    %35 = vector.broadcast %34 : vector<8x1xf32> to vector<8x8xf32>
    %36 = arith.mulf %31, %35 : vector<8x8xf32>
    %37 = arith.truncf %36 : vector<8x8xf32> to vector<8x8xbf16>
    %38 = arith.truncf %19 : vector<8x8xf32> to vector<8x8xbf16>
    %cst_18 = arith.constant dense<0.000000e+00> : vector<8x8xf32>
    %39 = tpu.matmul %37, %38, %cst_18 {dimension_numbers = #tpu.dot_dimension_numbers<[1], [0], [0], [1], [0, 0, 1, 1], [], []>} : vector<8x8xbf16>, vector<8x8xbf16>, vector<8x8xf32> -> vector<8x8xf32>
    %40 = vector.extract_strided_slice %12 {offsets = [0, 8], sizes = [8, 8], strides = [1, 1]} : vector<8x32xf32> to vector<8x8xf32>
    %41 = vector.extract_strided_slice %13 {offsets = [0, 8], sizes = [8, 8], strides = [1, 1]} : vector<8x32xf32> to vector<8x8xf32>
    %42 = vector.extract_strided_slice %14 {offsets = [0, 8], sizes = [8, 8], strides = [1, 1]} : vector<8x32xf32> to vector<8x8xf32>
    %43 = arith.truncf %40 : vector<8x8xf32> to vector<8x8xbf16>
    %44 = arith.truncf %41 : vector<8x8xf32> to vector<8x8xbf16>
    %cst_19 = arith.constant dense<0.000000e+00> : vector<8x8xf32>
    %45 = tpu.matmul %43, %44, %cst_19 {dimension_numbers = #tpu.dot_dimension_numbers<[1], [1], [0], [0], [0, 0, 1, 0], [], []>} : vector<8x8xbf16>, vector<8x8xbf16>, vector<8x8xf32> -> vector<8x8xf32>
    %cst_20 = arith.constant 0.353553385 : f32
    %46 = vector.broadcast %cst_20 : f32 to vector<8x8xf32>
    %47 = arith.mulf %45, %46 : vector<8x8xf32>
    %cst_21 = arith.constant -1.000000e+09 : f32
    %48 = vector.broadcast %cst_21 : f32 to vector<8x8xf32>
    %49 = arith.select %16, %48, %47 : vector<8x8xi1>, vector<8x8xf32>
    %cst_22 = arith.constant dense<0xFF800000> : vector<8xf32>
    %50 = vector.multi_reduction <maximumf>, %49, %cst_22 [1] : vector<8x8xf32> to vector<8xf32>
    %51 = vector.shape_cast %50 : vector<8xf32> to vector<8x1xf32>
    %52 = vector.broadcast %51 : vector<8x1xf32> to vector<8x8xf32>
    %53 = arith.subf %49, %52 : vector<8x8xf32>
    %54 = math.exp %53 : vector<8x8xf32>
    %cst_23 = arith.constant dense<0.000000e+00> : vector<8xf32>
    %55 = vector.multi_reduction <add>, %54, %cst_23 [1] : vector<8x8xf32> to vector<8xf32>
    %56 = vector.shape_cast %55 : vector<8xf32> to vector<8x1xf32>
    %57 = tpu.reciprocal %56 {approx = true} : vector<8x1xf32> -> vector<8x1xf32>
    %58 = vector.broadcast %57 : vector<8x1xf32> to vector<8x8xf32>
    %59 = arith.mulf %54, %58 : vector<8x8xf32>
    %60 = arith.truncf %59 : vector<8x8xf32> to vector<8x8xbf16>
    %61 = arith.truncf %42 : vector<8x8xf32> to vector<8x8xbf16>
    %cst_24 = arith.constant dense<0.000000e+00> : vector<8x8xf32>
    %62 = tpu.matmul %60, %61, %cst_24 {dimension_numbers = #tpu.dot_dimension_numbers<[1], [0], [0], [1], [0, 0, 1, 1], [], []>} : vector<8x8xbf16>, vector<8x8xbf16>, vector<8x8xf32> -> vector<8x8xf32>
    %63 = vector.extract_strided_slice %12 {offsets = [0, 16], sizes = [8, 8], strides = [1, 1]} : vector<8x32xf32> to vector<8x8xf32>
    %64 = vector.extract_strided_slice %13 {offsets = [0, 16], sizes = [8, 8], strides = [1, 1]} : vector<8x32xf32> to vector<8x8xf32>
    %65 = vector.extract_strided_slice %14 {offsets = [0, 16], sizes = [8, 8], strides = [1, 1]} : vector<8x32xf32> to vector<8x8xf32>
    %66 = arith.truncf %63 : vector<8x8xf32> to vector<8x8xbf16>
    %67 = arith.truncf %64 : vector<8x8xf32> to vector<8x8xbf16>
    %cst_25 = arith.constant dense<0.000000e+00> : vector<8x8xf32>
    %68 = tpu.matmul %66, %67, %cst_25 {dimension_numbers = #tpu.dot_dimension_numbers<[1], [1], [0], [0], [0, 0, 1, 0], [], []>} : vector<8x8xbf16>, vector<8x8xbf16>, vector<8x8xf32> -> vector<8x8xf32>
    %cst_26 = arith.constant 0.353553385 : f32
    %69 = vector.broadcast %cst_26 : f32 to vector<8x8xf32>
    %70 = arith.mulf %68, %69 : vector<8x8xf32>
    %cst_27 = arith.constant -1.000000e+09 : f32
    %71 = vector.broadcast %cst_27 : f32 to vector<8x8xf32>
    %72 = arith.select %16, %71, %70 : vector<8x8xi1>, vector<8x8xf32>
    %cst_28 = arith.constant dense<0xFF800000> : vector<8xf32>
    %73 = vector.multi_reduction <maximumf>, %72, %cst_28 [1] : vector<8x8xf32> to vector<8xf32>
    %74 = vector.shape_cast %73 : vector<8xf32> to vector<8x1xf32>
    %75 = vector.broadcast %74 : vector<8x1xf32> to vector<8x8xf32>
    %76 = arith.subf %72, %75 : vector<8x8xf32>
    %77 = math.exp %76 : vector<8x8xf32>
    %cst_29 = arith.constant dense<0.000000e+00> : vector<8xf32>
    %78 = vector.multi_reduction <add>, %77, %cst_29 [1] : vector<8x8xf32> to vector<8xf32>
    %79 = vector.shape_cast %78 : vector<8xf32> to vector<8x1xf32>
    %80 = tpu.reciprocal %79 {approx = true} : vector<8x1xf32> -> vector<8x1xf32>
    %81 = vector.broadcast %80 : vector<8x1xf32> to vector<8x8xf32>
    %82 = arith.mulf %77, %81 : vector<8x8xf32>
    %83 = arith.truncf %82 : vector<8x8xf32> to vector<8x8xbf16>
    %84 = arith.truncf %65 : vector<8x8xf32> to vector<8x8xbf16>
    %cst_30 = arith.constant dense<0.000000e+00> : vector<8x8xf32>
    %85 = tpu.matmul %83, %84, %cst_30 {dimension_numbers = #tpu.dot_dimension_numbers<[1], [0], [0], [1], [0, 0, 1, 1], [], []>} : vector<8x8xbf16>, vector<8x8xbf16>, vector<8x8xf32> -> vector<8x8xf32>
    %86 = vector.extract_strided_slice %12 {offsets = [0, 24], sizes = [8, 8], strides = [1, 1]} : vector<8x32xf32> to vector<8x8xf32>
    %87 = vector.extract_strided_slice %13 {offsets = [0, 24], sizes = [8, 8], strides = [1, 1]} : vector<8x32xf32> to vector<8x8xf32>
    %88 = vector.extract_strided_slice %14 {offsets = [0, 24], sizes = [8, 8], strides = [1, 1]} : vector<8x32xf32> to vector<8x8xf32>
    %89 = arith.truncf %86 : vector<8x8xf32> to vector<8x8xbf16>
    %90 = arith.truncf %87 : vector<8x8xf32> to vector<8x8xbf16>
    %cst_31 = arith.constant dense<0.000000e+00> : vector<8x8xf32>
    %91 = tpu.matmul %89, %90, %cst_31 {dimension_numbers = #tpu.dot_dimension_numbers<[1], [1], [0], [0], [0, 0, 1, 0], [], []>} : vector<8x8xbf16>, vector<8x8xbf16>, vector<8x8xf32> -> vector<8x8xf32>
    %cst_32 = arith.constant 0.353553385 : f32
    %92 = vector.broadcast %cst_32 : f32 to vector<8x8xf32>
    %93 = arith.mulf %91, %92 : vector<8x8xf32>
    %cst_33 = arith.constant -1.000000e+09 : f32
    %94 = vector.broadcast %cst_33 : f32 to vector<8x8xf32>
    %95 = arith.select %16, %94, %93 : vector<8x8xi1>, vector<8x8xf32>
    %cst_34 = arith.constant dense<0xFF800000> : vector<8xf32>
    %96 = vector.multi_reduction <maximumf>, %95, %cst_34 [1] : vector<8x8xf32> to vector<8xf32>
    %97 = vector.shape_cast %96 : vector<8xf32> to vector<8x1xf32>
    %98 = vector.broadcast %97 : vector<8x1xf32> to vector<8x8xf32>
    %99 = arith.subf %95, %98 : vector<8x8xf32>
    %100 = math.exp %99 : vector<8x8xf32>
    %cst_35 = arith.constant dense<0.000000e+00> : vector<8xf32>
    %101 = vector.multi_reduction <add>, %100, %cst_35 [1] : vector<8x8xf32> to vector<8xf32>
    %102 = vector.shape_cast %101 : vector<8xf32> to vector<8x1xf32>
    %103 = tpu.reciprocal %102 {approx = true} : vector<8x1xf32> -> vector<8x1xf32>
    %104 = vector.broadcast %103 : vector<8x1xf32> to vector<8x8xf32>
    %105 = arith.mulf %100, %104 : vector<8x8xf32>
    %106 = arith.truncf %105 : vector<8x8xf32> to vector<8x8xbf16>
    %107 = arith.truncf %88 : vector<8x8xf32> to vector<8x8xbf16>
    %cst_36 = arith.constant dense<0.000000e+00> : vector<8x8xf32>
    %108 = tpu.matmul %106, %107, %cst_36 {dimension_numbers = #tpu.dot_dimension_numbers<[1], [0], [0], [1], [0, 0, 1, 1], [], []>} : vector<8x8xbf16>, vector<8x8xbf16>, vector<8x8xf32> -> vector<8x8xf32>
    %109 = tpu.concatenate %39, %62, %85, %108 in 1 : vector<8x8xf32>, vector<8x8xf32>, vector<8x8xf32>, vector<8x8xf32> -> vector<8x32xf32>
    %c0_37 = arith.constant 0 : index
    %c0_38 = arith.constant 0 : index
    %110 = vector.load %arg6[%c0_37, %c0_38] : memref<32x32xf32, #tpu.memory_space<vmem>>, vector<32x32xf32>
    %111 = arith.truncf %109 : vector<8x32xf32> to vector<8x32xbf16>
    %112 = arith.truncf %110 : vector<32x32xf32> to vector<32x32xbf16>
    %cst_39 = arith.constant dense<0.000000e+00> : vector<8x32xf32>
    %113 = tpu.matmul %111, %112, %cst_39 {dimension_numbers = #tpu.dot_dimension_numbers<[1], [0], [0], [1], [0, 0, 1, 1], [], []>} : vector<8x32xbf16>, vector<32x32xbf16>, vector<8x32xf32> -> vector<8x32xf32>
    %114 = arith.addf %113, %1 : vector<8x32xf32>
    %c0_40 = arith.constant 0 : index
    %c0_41 = arith.constant 0 : index
    %115 = vector.load %arg7[%c0_40, %c0_41] : memref<1x32xf32, #tpu.memory_space<vmem>>, vector<1x32xf32>
    %c0_42 = arith.constant 0 : index
    %c0_43 = arith.constant 0 : index
    %116 = vector.load %arg8[%c0_42, %c0_43] : memref<1x32xf32, #tpu.memory_space<vmem>>, vector<1x32xf32>
    %cst_44 = arith.constant dense<0.000000e+00> : vector<8xf32>
    %117 = vector.multi_reduction <add>, %114, %cst_44 [1] : vector<8x32xf32> to vector<8xf32>
    %118 = vector.shape_cast %117 : vector<8xf32> to vector<8x1xf32>
    %cst_45 = arith.constant 3.200000e+01 : f32
    %119 = vector.broadcast %cst_45 : f32 to vector<8x1xf32>
    %120 = arith.divf %118, %119 : vector<8x1xf32>
    %121 = vector.broadcast %120 : vector<8x1xf32> to vector<8x32xf32>
    %122 = arith.subf %114, %121 : vector<8x32xf32>
    %123 = arith.mulf %122, %122 : vector<8x32xf32>
    %cst_46 = arith.constant dense<0.000000e+00> : vector<8xf32>
    %124 = vector.multi_reduction <add>, %123, %cst_46 [1] : vector<8x32xf32> to vector<8xf32>
    %125 = vector.shape_cast %124 : vector<8xf32> to vector<8x1xf32>
    %cst_47 = arith.constant 3.200000e+01 : f32
    %126 = vector.broadcast %cst_47 : f32 to vector<8x1xf32>
    %127 = arith.divf %125, %126 : vector<8x1xf32>
    %128 = vector.broadcast %120 : vector<8x1xf32> to vector<8x32xf32>
    %129 = arith.subf %114, %128 : vector<8x32xf32>
    %cst_48 = arith.constant 9.99999974E-6 : f32
    %130 = vector.broadcast %cst_48 : f32 to vector<8x1xf32>
    %131 = arith.addf %127, %130 : vector<8x1xf32>
    %132 = math.rsqrt %131 : vector<8x1xf32>
    %133 = vector.broadcast %132 : vector<8x1xf32> to vector<8x32xf32>
    %134 = arith.mulf %129, %133 : vector<8x32xf32>
    %135 = vector.broadcast %115 : vector<1x32xf32> to vector<8x32xf32>
    %136 = arith.mulf %134, %135 : vector<8x32xf32>
    %137 = vector.broadcast %116 : vector<1x32xf32> to vector<8x32xf32>
    %138 = arith.addf %136, %137 : vector<8x32xf32>
    %c0_49 = arith.constant 0 : index
    %c0_50 = arith.constant 0 : index
    %139 = vector.load %arg9[%c0_49, %c0_50] : memref<32x32xf32, #tpu.memory_space<vmem>>, vector<32x32xf32>
    %140 = arith.truncf %138 : vector<8x32xf32> to vector<8x32xbf16>
    %141 = arith.truncf %139 : vector<32x32xf32> to vector<32x32xbf16>
    %cst_51 = arith.constant dense<0.000000e+00> : vector<8x32xf32>
    %142 = tpu.matmul %140, %141, %cst_51 {dimension_numbers = #tpu.dot_dimension_numbers<[1], [0], [0], [1], [0, 0, 1, 1], [], []>} : vector<8x32xbf16>, vector<32x32xbf16>, vector<8x32xf32> -> vector<8x32xf32>
    %c0_52 = arith.constant 0 : index
    %c0_53 = arith.constant 0 : index
    %143 = vector.load %arg10[%c0_52, %c0_53] : memref<32x64xf32, #tpu.memory_space<vmem>>, vector<32x64xf32>
    %144 = arith.truncf %3 : vector<8x32xf32> to vector<8x32xbf16>
    %145 = arith.truncf %143 : vector<32x64xf32> to vector<32x64xbf16>
    %cst_54 = arith.constant dense<0.000000e+00> : vector<8x64xf32>
    %146 = tpu.matmul %144, %145, %cst_54 {dimension_numbers = #tpu.dot_dimension_numbers<[1], [0], [0], [1], [0, 0, 1, 1], [], []>} : vector<8x32xbf16>, vector<32x64xbf16>, vector<8x64xf32> -> vector<8x64xf32>
    %147 = vector.extract_strided_slice %146 {offsets = [0, 0], sizes = [8, 32], strides = [1, 1]} : vector<8x64xf32> to vector<8x32xf32>
    %148 = vector.extract_strided_slice %146 {offsets = [0, 32], sizes = [8, 32], strides = [1, 1]} : vector<8x64xf32> to vector<8x32xf32>
    %c0_i32_55 = arith.constant 0 : i32
    %149 = vector.broadcast %c0_i32_55 : i32 to vector<8x8xi32>
    %150 = arith.cmpi ne, %7, %149 : vector<8x8xi32>
    %151 = vector.extract_strided_slice %142 {offsets = [0, 0], sizes = [8, 8], strides = [1, 1]} : vector<8x32xf32> to vector<8x8xf32>
    %152 = vector.extract_strided_slice %147 {offsets = [0, 0], sizes = [8, 8], strides = [1, 1]} : vector<8x32xf32> to vector<8x8xf32>
    %153 = vector.extract_strided_slice %148 {offsets = [0, 0], sizes = [8, 8], strides = [1, 1]} : vector<8x32xf32> to vector<8x8xf32>
    %154 = arith.truncf %151 : vector<8x8xf32> to vector<8x8xbf16>
    %155 = arith.truncf %152 : vector<8x8xf32> to vector<8x8xbf16>
    %cst_56 = arith.constant dense<0.000000e+00> : vector<8x8xf32>
    %156 = tpu.matmul %154, %155, %cst_56 {dimension_numbers = #tpu.dot_dimension_numbers<[1], [1], [0], [0], [0, 0, 1, 0], [], []>} : vector<8x8xbf16>, vector<8x8xbf16>, vector<8x8xf32> -> vector<8x8xf32>
    %cst_57 = arith.constant 0.353553385 : f32
    %157 = vector.broadcast %cst_57 : f32 to vector<8x8xf32>
    %158 = arith.mulf %156, %157 : vector<8x8xf32>
    %cst_58 = arith.constant -1.000000e+09 : f32
    %159 = vector.broadcast %cst_58 : f32 to vector<8x8xf32>
    %160 = arith.select %150, %159, %158 : vector<8x8xi1>, vector<8x8xf32>
    %cst_59 = arith.constant dense<0xFF800000> : vector<8xf32>
    %161 = vector.multi_reduction <maximumf>, %160, %cst_59 [1] : vector<8x8xf32> to vector<8xf32>
    %162 = vector.shape_cast %161 : vector<8xf32> to vector<8x1xf32>
    %163 = vector.broadcast %162 : vector<8x1xf32> to vector<8x8xf32>
    %164 = arith.subf %160, %163 : vector<8x8xf32>
    %165 = math.exp %164 : vector<8x8xf32>
    %cst_60 = arith.constant dense<0.000000e+00> : vector<8xf32>
    %166 = vector.multi_reduction <add>, %165, %cst_60 [1] : vector<8x8xf32> to vector<8xf32>
    %167 = vector.shape_cast %166 : vector<8xf32> to vector<8x1xf32>
    %168 = tpu.reciprocal %167 {approx = true} : vector<8x1xf32> -> vector<8x1xf32>
    %169 = vector.broadcast %168 : vector<8x1xf32> to vector<8x8xf32>
    %170 = arith.mulf %165, %169 : vector<8x8xf32>
    %171 = arith.truncf %170 : vector<8x8xf32> to vector<8x8xbf16>
    %172 = arith.truncf %153 : vector<8x8xf32> to vector<8x8xbf16>
    %cst_61 = arith.constant dense<0.000000e+00> : vector<8x8xf32>
    %173 = tpu.matmul %171, %172, %cst_61 {dimension_numbers = #tpu.dot_dimension_numbers<[1], [0], [0], [1], [0, 0, 1, 1], [], []>} : vector<8x8xbf16>, vector<8x8xbf16>, vector<8x8xf32> -> vector<8x8xf32>
    %174 = vector.extract_strided_slice %142 {offsets = [0, 8], sizes = [8, 8], strides = [1, 1]} : vector<8x32xf32> to vector<8x8xf32>
    %175 = vector.extract_strided_slice %147 {offsets = [0, 8], sizes = [8, 8], strides = [1, 1]} : vector<8x32xf32> to vector<8x8xf32>
    %176 = vector.extract_strided_slice %148 {offsets = [0, 8], sizes = [8, 8], strides = [1, 1]} : vector<8x32xf32> to vector<8x8xf32>
    %177 = arith.truncf %174 : vector<8x8xf32> to vector<8x8xbf16>
    %178 = arith.truncf %175 : vector<8x8xf32> to vector<8x8xbf16>
    %cst_62 = arith.constant dense<0.000000e+00> : vector<8x8xf32>
    %179 = tpu.matmul %177, %178, %cst_62 {dimension_numbers = #tpu.dot_dimension_numbers<[1], [1], [0], [0], [0, 0, 1, 0], [], []>} : vector<8x8xbf16>, vector<8x8xbf16>, vector<8x8xf32> -> vector<8x8xf32>
    %cst_63 = arith.constant 0.353553385 : f32
    %180 = vector.broadcast %cst_63 : f32 to vector<8x8xf32>
    %181 = arith.mulf %179, %180 : vector<8x8xf32>
    %cst_64 = arith.constant -1.000000e+09 : f32
    %182 = vector.broadcast %cst_64 : f32 to vector<8x8xf32>
    %183 = arith.select %150, %182, %181 : vector<8x8xi1>, vector<8x8xf32>
    %cst_65 = arith.constant dense<0xFF800000> : vector<8xf32>
    %184 = vector.multi_reduction <maximumf>, %183, %cst_65 [1] : vector<8x8xf32> to vector<8xf32>
    %185 = vector.shape_cast %184 : vector<8xf32> to vector<8x1xf32>
    %186 = vector.broadcast %185 : vector<8x1xf32> to vector<8x8xf32>
    %187 = arith.subf %183, %186 : vector<8x8xf32>
    %188 = math.exp %187 : vector<8x8xf32>
    %cst_66 = arith.constant dense<0.000000e+00> : vector<8xf32>
    %189 = vector.multi_reduction <add>, %188, %cst_66 [1] : vector<8x8xf32> to vector<8xf32>
    %190 = vector.shape_cast %189 : vector<8xf32> to vector<8x1xf32>
    %191 = tpu.reciprocal %190 {approx = true} : vector<8x1xf32> -> vector<8x1xf32>
    %192 = vector.broadcast %191 : vector<8x1xf32> to vector<8x8xf32>
    %193 = arith.mulf %188, %192 : vector<8x8xf32>
    %194 = arith.truncf %193 : vector<8x8xf32> to vector<8x8xbf16>
    %195 = arith.truncf %176 : vector<8x8xf32> to vector<8x8xbf16>
    %cst_67 = arith.constant dense<0.000000e+00> : vector<8x8xf32>
    %196 = tpu.matmul %194, %195, %cst_67 {dimension_numbers = #tpu.dot_dimension_numbers<[1], [0], [0], [1], [0, 0, 1, 1], [], []>} : vector<8x8xbf16>, vector<8x8xbf16>, vector<8x8xf32> -> vector<8x8xf32>
    %197 = vector.extract_strided_slice %142 {offsets = [0, 16], sizes = [8, 8], strides = [1, 1]} : vector<8x32xf32> to vector<8x8xf32>
    %198 = vector.extract_strided_slice %147 {offsets = [0, 16], sizes = [8, 8], strides = [1, 1]} : vector<8x32xf32> to vector<8x8xf32>
    %199 = vector.extract_strided_slice %148 {offsets = [0, 16], sizes = [8, 8], strides = [1, 1]} : vector<8x32xf32> to vector<8x8xf32>
    %200 = arith.truncf %197 : vector<8x8xf32> to vector<8x8xbf16>
    %201 = arith.truncf %198 : vector<8x8xf32> to vector<8x8xbf16>
    %cst_68 = arith.constant dense<0.000000e+00> : vector<8x8xf32>
    %202 = tpu.matmul %200, %201, %cst_68 {dimension_numbers = #tpu.dot_dimension_numbers<[1], [1], [0], [0], [0, 0, 1, 0], [], []>} : vector<8x8xbf16>, vector<8x8xbf16>, vector<8x8xf32> -> vector<8x8xf32>
    %cst_69 = arith.constant 0.353553385 : f32
    %203 = vector.broadcast %cst_69 : f32 to vector<8x8xf32>
    %204 = arith.mulf %202, %203 : vector<8x8xf32>
    %cst_70 = arith.constant -1.000000e+09 : f32
    %205 = vector.broadcast %cst_70 : f32 to vector<8x8xf32>
    %206 = arith.select %150, %205, %204 : vector<8x8xi1>, vector<8x8xf32>
    %cst_71 = arith.constant dense<0xFF800000> : vector<8xf32>
    %207 = vector.multi_reduction <maximumf>, %206, %cst_71 [1] : vector<8x8xf32> to vector<8xf32>
    %208 = vector.shape_cast %207 : vector<8xf32> to vector<8x1xf32>
    %209 = vector.broadcast %208 : vector<8x1xf32> to vector<8x8xf32>
    %210 = arith.subf %206, %209 : vector<8x8xf32>
    %211 = math.exp %210 : vector<8x8xf32>
    %cst_72 = arith.constant dense<0.000000e+00> : vector<8xf32>
    %212 = vector.multi_reduction <add>, %211, %cst_72 [1] : vector<8x8xf32> to vector<8xf32>
    %213 = vector.shape_cast %212 : vector<8xf32> to vector<8x1xf32>
    %214 = tpu.reciprocal %213 {approx = true} : vector<8x1xf32> -> vector<8x1xf32>
    %215 = vector.broadcast %214 : vector<8x1xf32> to vector<8x8xf32>
    %216 = arith.mulf %211, %215 : vector<8x8xf32>
    %217 = arith.truncf %216 : vector<8x8xf32> to vector<8x8xbf16>
    %218 = arith.truncf %199 : vector<8x8xf32> to vector<8x8xbf16>
    %cst_73 = arith.constant dense<0.000000e+00> : vector<8x8xf32>
    %219 = tpu.matmul %217, %218, %cst_73 {dimension_numbers = #tpu.dot_dimension_numbers<[1], [0], [0], [1], [0, 0, 1, 1], [], []>} : vector<8x8xbf16>, vector<8x8xbf16>, vector<8x8xf32> -> vector<8x8xf32>
    %220 = vector.extract_strided_slice %142 {offsets = [0, 24], sizes = [8, 8], strides = [1, 1]} : vector<8x32xf32> to vector<8x8xf32>
    %221 = vector.extract_strided_slice %147 {offsets = [0, 24], sizes = [8, 8], strides = [1, 1]} : vector<8x32xf32> to vector<8x8xf32>
    %222 = vector.extract_strided_slice %148 {offsets = [0, 24], sizes = [8, 8], strides = [1, 1]} : vector<8x32xf32> to vector<8x8xf32>
    %223 = arith.truncf %220 : vector<8x8xf32> to vector<8x8xbf16>
    %224 = arith.truncf %221 : vector<8x8xf32> to vector<8x8xbf16>
    %cst_74 = arith.constant dense<0.000000e+00> : vector<8x8xf32>
    %225 = tpu.matmul %223, %224, %cst_74 {dimension_numbers = #tpu.dot_dimension_numbers<[1], [1], [0], [0], [0, 0, 1, 0], [], []>} : vector<8x8xbf16>, vector<8x8xbf16>, vector<8x8xf32> -> vector<8x8xf32>
    %cst_75 = arith.constant 0.353553385 : f32
    %226 = vector.broadcast %cst_75 : f32 to vector<8x8xf32>
    %227 = arith.mulf %225, %226 : vector<8x8xf32>
    %cst_76 = arith.constant -1.000000e+09 : f32
    %228 = vector.broadcast %cst_76 : f32 to vector<8x8xf32>
    %229 = arith.select %150, %228, %227 : vector<8x8xi1>, vector<8x8xf32>
    %cst_77 = arith.constant dense<0xFF800000> : vector<8xf32>
    %230 = vector.multi_reduction <maximumf>, %229, %cst_77 [1] : vector<8x8xf32> to vector<8xf32>
    %231 = vector.shape_cast %230 : vector<8xf32> to vector<8x1xf32>
    %232 = vector.broadcast %231 : vector<8x1xf32> to vector<8x8xf32>
    %233 = arith.subf %229, %232 : vector<8x8xf32>
    %234 = math.exp %233 : vector<8x8xf32>
    %cst_78 = arith.constant dense<0.000000e+00> : vector<8xf32>
    %235 = vector.multi_reduction <add>, %234, %cst_78 [1] : vector<8x8xf32> to vector<8xf32>
    %236 = vector.shape_cast %235 : vector<8xf32> to vector<8x1xf32>
    %237 = tpu.reciprocal %236 {approx = true} : vector<8x1xf32> -> vector<8x1xf32>
    %238 = vector.broadcast %237 : vector<8x1xf32> to vector<8x8xf32>
    %239 = arith.mulf %234, %238 : vector<8x8xf32>
    %240 = arith.truncf %239 : vector<8x8xf32> to vector<8x8xbf16>
    %241 = arith.truncf %222 : vector<8x8xf32> to vector<8x8xbf16>
    %cst_79 = arith.constant dense<0.000000e+00> : vector<8x8xf32>
    %242 = tpu.matmul %240, %241, %cst_79 {dimension_numbers = #tpu.dot_dimension_numbers<[1], [0], [0], [1], [0, 0, 1, 1], [], []>} : vector<8x8xbf16>, vector<8x8xbf16>, vector<8x8xf32> -> vector<8x8xf32>
    %243 = tpu.concatenate %173, %196, %219, %242 in 1 : vector<8x8xf32>, vector<8x8xf32>, vector<8x8xf32>, vector<8x8xf32> -> vector<8x32xf32>
    %c0_80 = arith.constant 0 : index
    %c0_81 = arith.constant 0 : index
    %244 = vector.load %arg11[%c0_80, %c0_81] : memref<32x32xf32, #tpu.memory_space<vmem>>, vector<32x32xf32>
    %245 = arith.truncf %243 : vector<8x32xf32> to vector<8x32xbf16>
    %246 = arith.truncf %244 : vector<32x32xf32> to vector<32x32xbf16>
    %cst_82 = arith.constant dense<0.000000e+00> : vector<8x32xf32>
    %247 = tpu.matmul %245, %246, %cst_82 {dimension_numbers = #tpu.dot_dimension_numbers<[1], [0], [0], [1], [0, 0, 1, 1], [], []>} : vector<8x32xbf16>, vector<32x32xbf16>, vector<8x32xf32> -> vector<8x32xf32>
    %248 = arith.addf %247, %138 : vector<8x32xf32>
    %c0_83 = arith.constant 0 : index
    %c0_84 = arith.constant 0 : index
    %249 = vector.load %arg12[%c0_83, %c0_84] : memref<1x32xf32, #tpu.memory_space<vmem>>, vector<1x32xf32>
    %c0_85 = arith.constant 0 : index
    %c0_86 = arith.constant 0 : index
    %250 = vector.load %arg13[%c0_85, %c0_86] : memref<1x32xf32, #tpu.memory_space<vmem>>, vector<1x32xf32>
    %cst_87 = arith.constant dense<0.000000e+00> : vector<8xf32>
    %251 = vector.multi_reduction <add>, %248, %cst_87 [1] : vector<8x32xf32> to vector<8xf32>
    %252 = vector.shape_cast %251 : vector<8xf32> to vector<8x1xf32>
    %cst_88 = arith.constant 3.200000e+01 : f32
    %253 = vector.broadcast %cst_88 : f32 to vector<8x1xf32>
    %254 = arith.divf %252, %253 : vector<8x1xf32>
    %255 = vector.broadcast %254 : vector<8x1xf32> to vector<8x32xf32>
    %256 = arith.subf %248, %255 : vector<8x32xf32>
    %257 = arith.mulf %256, %256 : vector<8x32xf32>
    %cst_89 = arith.constant dense<0.000000e+00> : vector<8xf32>
    %258 = vector.multi_reduction <add>, %257, %cst_89 [1] : vector<8x32xf32> to vector<8xf32>
    %259 = vector.shape_cast %258 : vector<8xf32> to vector<8x1xf32>
    %cst_90 = arith.constant 3.200000e+01 : f32
    %260 = vector.broadcast %cst_90 : f32 to vector<8x1xf32>
    %261 = arith.divf %259, %260 : vector<8x1xf32>
    %262 = vector.broadcast %254 : vector<8x1xf32> to vector<8x32xf32>
    %263 = arith.subf %248, %262 : vector<8x32xf32>
    %cst_91 = arith.constant 9.99999974E-6 : f32
    %264 = vector.broadcast %cst_91 : f32 to vector<8x1xf32>
    %265 = arith.addf %261, %264 : vector<8x1xf32>
    %266 = math.rsqrt %265 : vector<8x1xf32>
    %267 = vector.broadcast %266 : vector<8x1xf32> to vector<8x32xf32>
    %268 = arith.mulf %263, %267 : vector<8x32xf32>
    %269 = vector.broadcast %249 : vector<1x32xf32> to vector<8x32xf32>
    %270 = arith.mulf %268, %269 : vector<8x32xf32>
    %271 = vector.broadcast %250 : vector<1x32xf32> to vector<8x32xf32>
    %272 = arith.addf %270, %271 : vector<8x32xf32>
    %c0_92 = arith.constant 0 : index
    %c0_93 = arith.constant 0 : index
    %273 = vector.load %arg14[%c0_92, %c0_93] : memref<32x64xf32, #tpu.memory_space<vmem>>, vector<32x64xf32>
    %274 = arith.truncf %272 : vector<8x32xf32> to vector<8x32xbf16>
    %275 = arith.truncf %273 : vector<32x64xf32> to vector<32x64xbf16>
    %cst_94 = arith.constant dense<0.000000e+00> : vector<8x64xf32>
    %276 = tpu.matmul %274, %275, %cst_94 {dimension_numbers = #tpu.dot_dimension_numbers<[1], [0], [0], [1], [0, 0, 1, 1], [], []>} : vector<8x32xbf16>, vector<32x64xbf16>, vector<8x64xf32> -> vector<8x64xf32>
    %cst_95 = arith.constant 0.000000e+00 : f32
    %277 = vector.broadcast %cst_95 : f32 to vector<8x64xf32>
    %278 = arith.maximumf %276, %277 : vector<8x64xf32>
    %c0_96 = arith.constant 0 : index
    %c0_97 = arith.constant 0 : index
    %279 = vector.load %arg15[%c0_96, %c0_97] : memref<64x32xf32, #tpu.memory_space<vmem>>, vector<64x32xf32>
    %280 = arith.truncf %278 : vector<8x64xf32> to vector<8x64xbf16>
    %281 = arith.truncf %279 : vector<64x32xf32> to vector<64x32xbf16>
    %cst_98 = arith.constant dense<0.000000e+00> : vector<8x32xf32>
    %282 = tpu.matmul %280, %281, %cst_98 {dimension_numbers = #tpu.dot_dimension_numbers<[1], [0], [0], [1], [0, 0, 1, 1], [], []>} : vector<8x64xbf16>, vector<64x32xbf16>, vector<8x32xf32> -> vector<8x32xf32>
    %283 = arith.addf %282, %272 : vector<8x32xf32>
    %c0_99 = arith.constant 0 : index
    %c0_100 = arith.constant 0 : index
    %284 = vector.load %arg16[%c0_99, %c0_100] : memref<1x32xf32, #tpu.memory_space<vmem>>, vector<1x32xf32>
    %c0_101 = arith.constant 0 : index
    %c0_102 = arith.constant 0 : index
    %285 = vector.load %arg17[%c0_101, %c0_102] : memref<1x32xf32, #tpu.memory_space<vmem>>, vector<1x32xf32>
    %cst_103 = arith.constant dense<0.000000e+00> : vector<8xf32>
    %286 = vector.multi_reduction <add>, %283, %cst_103 [1] : vector<8x32xf32> to vector<8xf32>
    %287 = vector.shape_cast %286 : vector<8xf32> to vector<8x1xf32>
    %cst_104 = arith.constant 3.200000e+01 : f32
    %288 = vector.broadcast %cst_104 : f32 to vector<8x1xf32>
    %289 = arith.divf %287, %288 : vector<8x1xf32>
    %290 = vector.broadcast %289 : vector<8x1xf32> to vector<8x32xf32>
    %291 = arith.subf %283, %290 : vector<8x32xf32>
    %292 = arith.mulf %291, %291 : vector<8x32xf32>
    %cst_105 = arith.constant dense<0.000000e+00> : vector<8xf32>
    %293 = vector.multi_reduction <add>, %292, %cst_105 [1] : vector<8x32xf32> to vector<8xf32>
    %294 = vector.shape_cast %293 : vector<8xf32> to vector<8x1xf32>
    %cst_106 = arith.constant 3.200000e+01 : f32
    %295 = vector.broadcast %cst_106 : f32 to vector<8x1xf32>
    %296 = arith.divf %294, %295 : vector<8x1xf32>
    %297 = vector.broadcast %289 : vector<8x1xf32> to vector<8x32xf32>
    %298 = arith.subf %283, %297 : vector<8x32xf32>
    %cst_107 = arith.constant 9.99999974E-6 : f32
    %299 = vector.broadcast %cst_107 : f32 to vector<8x1xf32>
    %300 = arith.addf %296, %299 : vector<8x1xf32>
    %301 = math.rsqrt %300 : vector<8x1xf32>
    %302 = vector.broadcast %301 : vector<8x1xf32> to vector<8x32xf32>
    %303 = arith.mulf %298, %302 : vector<8x32xf32>
    %304 = vector.broadcast %284 : vector<1x32xf32> to vector<8x32xf32>
    %305 = arith.mulf %303, %304 : vector<8x32xf32>
    %306 = vector.broadcast %285 : vector<1x32xf32> to vector<8x32xf32>
    %307 = arith.addf %305, %306 : vector<8x32xf32>
    %c0_108 = arith.constant 0 : index
    %c0_109 = arith.constant 0 : index
    %c0_110 = arith.constant 0 : index
    %308 = vector.load %arg18[%c0_108, %c0_109, %c0_110] : memref<1x8x32xf32, #tpu.memory_space<vmem>>, vector<1x8x32xf32>
    %309 = vector.shape_cast %308 : vector<1x8x32xf32> to vector<8x32xf32>
    %310 = vector.shape_cast %307 : vector<8x32xf32> to vector<1x8x32xf32>
    tpu.vector_store %arg18[%c0_108, %c0_109, %c0_110], %310 {strides = array<i32>} : memref<1x8x32xf32, #tpu.memory_space<vmem>>, vector<1x8x32xf32>,
    return
  }
  func.func @transform_0(%arg0: i32) -> (i32, i32, i32) {
    %c0_i32 = arith.constant 0 : i32
    %c0_i32_0 = arith.constant 0 : i32
    %c0_i32_1 = arith.constant 0 : i32
    return %arg0, %c0_i32, %c0_i32_0 : i32, i32, i32
  }
  func.func @transform_1(%arg0: i32) -> (i32, i32, i32) {
    %c0_i32 = arith.constant 0 : i32
    %c0_i32_0 = arith.constant 0 : i32
    %c0_i32_1 = arith.constant 0 : i32
    return %arg0, %c0_i32, %c0_i32_0 : i32, i32, i32
  }
  func.func @transform_2(%arg0: i32) -> (i32, i32, i32) {
    %c0_i32 = arith.constant 0 : i32
    %c0_i32_0 = arith.constant 0 : i32
    %c0_i32_1 = arith.constant 0 : i32
    return %arg0, %c0_i32, %c0_i32_0 : i32, i32, i32
  }
  func.func @transform_3(%arg0: i32) -> (i32, i32, i32) {
    %c0_i32 = arith.constant 0 : i32
    %c0_i32_0 = arith.constant 0 : i32
    %c0_i32_1 = arith.constant 0 : i32
    return %arg0, %c0_i32, %c0_i32_0 : i32, i32, i32
  }
  func.func @transform_4(%arg0: i32) -> (i32, i32) {
    %c0_i32 = arith.constant 0 : i32
    %c0_i32_0 = arith.constant 0 : i32
    %c0_i32_1 = arith.constant 0 : i32
    return %c0_i32, %c0_i32_0 : i32, i32
  }
  func.func @transform_5(%arg0: i32) -> (i32, i32) {
    %c0_i32 = arith.constant 0 : i32
    %c0_i32_0 = arith.constant 0 : i32
    %c0_i32_1 = arith.constant 0 : i32
    return %c0_i32, %c0_i32_0 : i32, i32
  }
  func.func @transform_6(%arg0: i32) -> (i32, i32) {
    %c0_i32 = arith.constant 0 : i32
    %c0_i32_0 = arith.constant 0 : i32
    %c0_i32_1 = arith.constant 0 : i32
    return %c0_i32, %c0_i32_0 : i32, i32
  }
  func.func @transform_7(%arg0: i32) -> (i32, i32) {
    %c0_i32 = arith.constant 0 : i32
    %c0_i32_0 = arith.constant 0 : i32
    %c0_i32_1 = arith.constant 0 : i32
    return %c0_i32, %c0_i32_0 : i32, i32
  }
  func.func @transform_8(%arg0: i32) -> (i32, i32) {
    %c0_i32 = arith.constant 0 : i32
    %c0_i32_0 = arith.constant 0 : i32
    %c0_i32_1 = arith.constant 0 : i32
    return %c0_i32, %c0_i32_0 : i32, i32
  }
  func.func @transform_9(%arg0: i32) -> (i32, i32) {
    %c0_i32 = arith.constant 0 : i32
    %c0_i32_0 = arith.constant 0 : i32
    %c0_i32_1 = arith.constant 0 : i32
    return %c0_i32, %c0_i32_0 : i32, i32
  }
  func.func @transform_10(%arg0: i32) -> (i32, i32) {
    %c0_i32 = arith.constant 0 : i32
    %c0_i32_0 = arith.constant 0 : i32
    %c0_i32_1 = arith.constant 0 : i32
    return %c0_i32, %c0_i32_0 : i32, i32
  }
  func.func @transform_11(%arg0: i32) -> (i32, i32) {
    %c0_i32 = arith.constant 0 : i32
    %c0_i32_0 = arith.constant 0 : i32
    %c0_i32_1 = arith.constant 0 : i32
    return %c0_i32, %c0_i32_0 : i32, i32
  }
  func.func @transform_12(%arg0: i32) -> (i32, i32) {
    %c0_i32 = arith.constant 0 : i32
    %c0_i32_0 = arith.constant 0 : i32
    %c0_i32_1 = arith.constant 0 : i32
    return %c0_i32, %c0_i32_0 : i32, i32
  }
  func.func @transform_13(%arg0: i32) -> (i32, i32) {
    %c0_i32 = arith.constant 0 : i32
    %c0_i32_0 = arith.constant 0 : i32
    %c0_i32_1 = arith.constant 0 : i32
    return %c0_i32, %c0_i32_0 : i32, i32
  }
  func.func @transform_14(%arg0: i32) -> (i32, i32) {
    %c0_i32 = arith.constant 0 : i32
    %c0_i32_0 = arith.constant 0 : i32
    %c0_i32_1 = arith.constant 0 : i32
    return %c0_i32, %c0_i32_0 : i32, i32
  }
  func.func @transform_15(%arg0: i32) -> (i32, i32) {
    %c0_i32 = arith.constant 0 : i32
    %c0_i32_0 = arith.constant 0 : i32
    %c0_i32_1 = arith.constant 0 : i32
    return %c0_i32, %c0_i32_0 : i32, i32
  }
  func.func @transform_16(%arg0: i32) -> (i32, i32) {
    %c0_i32 = arith.constant 0 : i32
    %c0_i32_0 = arith.constant 0 : i32
    %c0_i32_1 = arith.constant 0 : i32
    return %c0_i32, %c0_i32_0 : i32, i32
  }
  func.func @transform_17(%arg0: i32) -> (i32, i32, i32) {
    %c0_i32 = arith.constant 0 : i32
    %c0_i32_0 = arith.constant 0 : i32
    %c0_i32_1 = arith.constant 0 : i32
    return %arg0, %c0_i32, %c0_i32_0 : i32, i32, i32
  }
}

</mosaic_0001>

<bundles_post_ra>
// kernel: decode_layer_forward.1
= control target key start
LH: loop header
LB: loop body
LE: loop exit
PB: predicated region body
PF: predicated region fallthrough
CT: control target
= control target key end

     0   :  { %s3711_s0 = inlined_call_operand.hbm [shape: f32[2,8,32], index: 0, kind: input, shape index: {}]   ;;  %s3712_s1 = inlined_call_operand.hbm [shape: f32[2,8,32], index: 1, kind: input, shape index: {}]   ;;  %s3713_s2 = inlined_call_operand.vmem [shape: s32[2,8,8], index: 2, kind: input, shape index: {}]   ;;  %s3714_s3 = inlined_call_operand.vmem [shape: s32[2,8,8], index: 3, kind: input, shape index: {}]   ;;  %s3715_s4 = inlined_call_operand.hbm [shape: f32[32,96], index: 4, kind: input, shape index: {}]   ;;  %s3716_s5 = inlined_call_operand.hbm [shape: f32[32,32], index: 5, kind: input, shape index: {}]   ;;  %s3717_s6 = inlined_call_operand.vmem [shape: f32[1,32], index: 6, kind: input, shape index: {}, may-alias: {6,11,15}]   ;;  %s3718_s7 = inlined_call_operand.vmem [shape: f32[1,32], index: 7, kind: input, shape index: {}, may-alias: {7,12,16}]   ;;  %s3719_s8 = inlined_call_operand.hbm [shape: f32[32,32], index: 8, kind: input, shape index: {}]   ;;  %s3720_s9 = inlined_call_operand.hbm [shape: f32[32,64], index: 9, kind: input, shape index: {}]   ;;  %s3721_s10 = inlined_call_operand.hbm [shape: f32[32,32], index: 10, kind: input, shape index: {}]   ;;  %s3722_s11 = inlined_call_operand.vmem [shape: f32[1,32], index: 11, kind: input, shape index: {}, may-alias: {6,11,15}]   ;;  %s3723_s12 = inlined_call_operand.vmem [shape: f32[1,32], index: 12, kind: input, shape index: {}, may-alias: {7,12,16}]   ;;  %s3724_s13 = inlined_call_operand.hbm [shape: f32[32,64], index: 13, kind: input, shape index: {}]   ;;  %s3725_s14 = inlined_call_operand.vmem [shape: f32[64,32], index: 14, kind: input, shape index: {}]   ;;  %s3726_s15 = inlined_call_operand.vmem [shape: f32[1,32], index: 15, kind: input, shape index: {}, may-alias: {6,11,15}]   ;;  %s3727_s16 = inlined_call_operand.vmem [shape: f32[1,32], index: 16, kind: input, shape index: {}, may-alias: {7,12,16}]   ;;  %s3728_s17 = inlined_call_operand.hbm [shape: f32[2,8,32], index: 17, kind: output, shape index: {}]  }
   0x1   :  { %3743 = sst [smem:[#allocation30_spill]] %s3711_s0 }
   0x2   :  { %3744 = sst [smem:[#allocation31_spill]] %s3712_s1 }
   0x3   :  { %3745 = sst [smem:[#allocation32_spill]] %s3715_s4 }
   0x4   :  { %3746 = sst [smem:[#allocation33_spill]] %s3716_s5 }
   0x5   :  { %3747 = sst [smem:[#allocation34_spill]] %s3719_s8 }
   0x6   :  { %3748 = sst [smem:[#allocation35_spill]] %s3720_s9 }
   0x7   :  { %3749 = sst [smem:[#allocation36_spill]] %s3721_s10 }
   0x8   :  { %3750 = sst [smem:[#allocation37_spill]] %s3724_s13 }
   0x9   :  { %3751 = sst [smem:[#allocation38_spill]] %s3726_s15 }
   0xa   :  { %3752 = sst [smem:[#allocation39_spill]] %s3727_s16 }
   0xb   :  { %3753 = sst [smem:[#allocation40_spill]] %s3728_s17 }
   0xc   :  { %22 = vsyncpa [#allocation3], 0 }
   0xd   :  { %24 = vsyncpa [#allocation3 + $0x1], 0 }
   0xe   :  { %25 = vsyncpa [#allocation6], 0 }
   0xf   :  { %27 = vsyncpa [#allocation6 + $0x1], 0 }
  0x10   :  { %28 = vsyncpa [#allocation9], 0 }
  0x11   :  { %29 = vsyncpa [#allocation12], 0 }
  0x12   :  { %30 = vsyncpa [#allocation15], 0 }
  0x13   :  { %31 = vsyncpa [#allocation4], 0 }
  0x14   :  { %33 = vsyncpa [#allocation4 + $0x1], 0  ;;  %s3147_s24 = smov 0   ;;  %s3149_s25 = smov 0  }
  0x15   :  { %s3151_s26 = smov 0   ;;  %s3153_s27 = smov 0  }
  0x16 LB: > { %3754 = sst [smem:[#allocation24_spill]] %s3016_s24  ;;  %s3030_s28 = smov [#allocation7]   ;;  %s3028_s27 = sphi %s3153_s27, %s3797_s27   ;;  %s3024_s26 = sphi %s3151_s26, %s3802_s26   ;;  %s3020_s25 = sphi %s3149_s25, %s3801_s25   ;;  %s3016_s24 = sphi %s3147_s24, %s3800_s24  }
  0x17   : > { %3755 = sst [smem:[#allocation25_spill]] %s3024_s26  ;;  %s459_s29 = sshll.u32 %s3030_s28, 4  ;;  %s460_s29 = int_to_ptr.vmem [resolvable:$true] %s459_s29 }
  0x18   : > { %s3168_s0 = sadd.s32 4294967295, %s3028_s27   ;;  %p2296_p0 = scmp.ge.s32.totalorder %s3028_s27, 1 }
  0x19   : > { %p3739_p1 = scmp.eq.s32.totalorder %s3168_s0, 0  ;;  %p447_p2 = scmp.lt.s32.totalorder %s3028_s27, 3 }
  0x1a   : > { %s3031_s18 = smov [#allocation8]   ;;  %s3032_s20 = smov [#allocation11]  }
  0x1b   : > { %p3173_p3 = pnand %p2296_p0, %p447_p2  ;;  %s472_s19 = sshll.u32 %s3031_s18, 4  ;;  %s3186_s19 = int_to_ptr.vmem [resolvable:$true] %s472_s19 }
  0x1c   : > { %s504_s21 = sshll.u32 %s3032_s20, 4  ;;  %s2743_s23 = scalar_lea.vmem %s460_s29, 512  ;;  %s3188_s21 = int_to_ptr.vmem [resolvable:$true] %s504_s21 }
  0x1d   : > { %s3756_s30 = scalar_select %p3173_p3, 1, 0 }
  0x1e   : > { %p2594_p5 = pneg %p3173_p3  ;;  %p2744_p8 = scmp.ne.s32.totalorder %s460_s29, %s2743_s23 }
  0x1f   : > { %p2751_p11 = scmp.lt.s32.totalorder %s460_s29, %s460_s29  ;;  %p2752_p12 = scmp.lt.s32.totalorder %s2743_s23, %s2743_s23 }
  0x20   : > { %p3182_p6 = pnand %p2594_p5, %p3739_p1 }
  0x21   : > { %p2753_p13 = por %p2752_p12, %p2751_p11 }
  0x22   : > { %p3192_p7 = pneg %p3182_p6 }
  0x24   : > { %p2746_p9 = pnand %p2744_p8, %p3192_p7 }
  0x26   : > { %p2747_p10 = pneg %p2746_p9 }
  0x28   : > { %p2754_p0 = pnand %p2753_p13, %p2747_p10 }
  0x2a   : > { %2757 = shalt.err (!%p2754_p0)
}
  0x2b   : > { %s3033_s28 = smov 128   ;;  %s3034_s18 = smov 8  }
  0x2c   : > { %s3759_s4 = sld [smem:[#allocation32_spill]]  ;;  %s2769_s16 = scalar_lea.vmem %s3186_s19, 512 }
  0x2d   : > { %p2770_p2 = scmp.ne.s32.totalorder %s3186_s19, %s2769_s16  ;;  %p2777_p9 = scmp.lt.s32.totalorder %s3186_s19, %s3186_s19 }
  0x2e   : > { %p2778_p10 = scmp.lt.s32.totalorder %s2769_s16, %s2769_s16 }
  0x2f   : > { %p2772_p5 = pnand %p2770_p2, %p3192_p7 }
  0x30   : > { %p2779_p11 = por %p2778_p10, %p2777_p9 }
  0x31   : > { %p2773_p8 = pneg %p2772_p5 }
  0x32   : > { %2597 = dma.hbm_to_vmem [thread:$0]  (!%p3182_p6), %s3759_s4, 512, %s460_s29, [#allocation6], %s3033_s28, %s3033_s28, %s3034_s18  }
  0x33   : > { %p2780_p12 = pnand %p2779_p11, %p2773_p8 }
  0x35   : > { %2783 = shalt.err (!%p2780_p12)
}
  0x36   : > { %s3760_s5 = sld [smem:[#allocation33_spill]]  ;;  %s2795_s29 = scalar_lea.vmem %s3188_s21, 512 }
  0x37   : > { %p2796_p13 = scmp.ne.s32.totalorder %s3188_s21, %s2795_s29  ;;  %p2803_p5 = scmp.lt.s32.totalorder %s3188_s21, %s3188_s21 }
  0x38   : > { %p2804_p8 = scmp.lt.s32.totalorder %s2795_s29, %s2795_s29 }
  0x39   : > { %p2798_p0 = pnand %p2796_p13, %p3192_p7 }
  0x3a   : > { %p2805_p9 = por %p2804_p8, %p2803_p5 }
  0x3b   : > { %p2799_p2 = pneg %p2798_p0 }
  0x3c   : > { %2600 = dma.hbm_to_vmem [thread:$0]  (!%p3182_p6), %s3760_s5, 512, %s3186_s19, [#allocation9], %s3033_s28, %s3033_s28, %s3034_s18  }
  0x3d   : > { %p2806_p10 = pnand %p2805_p9, %p2799_p2 }
  0x3f   : > { %2809 = shalt.err (!%p2806_p10)
}
  0x40   : > { %s3761_s9 = sld [smem:[#allocation35_spill]]  ;;  %s3035_s19 = smov [#allocation10]  }
  0x41   : > { %s491_s23 = sshll.u32 %s3035_s19, 4  ;;  %s3036_s17 = smov [#allocation13]   ;;  %s492_s23 = int_to_ptr.vmem [resolvable:$true] %s491_s23 }
  0x42   : > { %s517_s4 = sshll.u32 %s3036_s17, 4  ;;  %s2821_s29 = scalar_lea.vmem %s492_s23, 512  ;;  %s518_s4 = int_to_ptr.vmem [resolvable:$true] %s517_s4 }
  0x43   : > { %p2822_p11 = scmp.ne.s32.totalorder %s492_s23, %s2821_s29  ;;  %p2829_p0 = scmp.lt.s32.totalorder %s492_s23, %s492_s23 }
  0x44   : > { %p2830_p2 = scmp.lt.s32.totalorder %s2821_s29, %s2821_s29 }
  0x45   : > { %p2824_p12 = pnand %p2822_p11, %p3192_p7 }
  0x46   : > { %2606 = dma.hbm_to_vmem [thread:$0]  (!%p3182_p6), %s3761_s9, 512, %s3188_s21, [#allocation12], %s3033_s28, %s3033_s28, %s3034_s18  }
  0x47   : > { %p2825_p13 = pneg %p2824_p12  ;;  %p2831_p5 = por %p2830_p2, %p2829_p0 }
  0x49   : > { %p2832_p8 = pnand %p2831_p5, %p2825_p13 }
  0x4b   : > { %2835 = shalt.err (!%p2832_p8)
}
  0x4c   : > { %s3762_s8 = sld [smem:[#allocation34_spill]]  ;;  %s2847_s20 = scalar_lea.vmem %s518_s4, 512 }
  0x4d   : > { %p2848_p9 = scmp.ne.s32.totalorder %s518_s4, %s2847_s20  ;;  %p2855_p12 = scmp.lt.s32.totalorder %s518_s4, %s518_s4 }
  0x4e   : > { %p2856_p0 = scmp.lt.s32.totalorder %s2847_s20, %s2847_s20 }
  0x4f   : > { %p2850_p10 = pnand %p2848_p9, %p3192_p7 }
  0x50   : > { %p2857_p13 = por %p2856_p0, %p2855_p12 }
  0x51   : > { %p2851_p11 = pneg %p2850_p10 }
  0x52   : > { %2603 = dma.hbm_to_vmem [thread:$0]  (!%p3182_p6), %s3762_s8, 512, %s492_s23, [#allocation9], %s3033_s28, %s3033_s28, %s3034_s18  }
  0x53   : > { %p2858_p2 = pnand %p2857_p13, %p2851_p11 }
  0x55   : > { %2861 = shalt.err (!%p2858_p2)
}
  0x56   : > { %s3763_s10 = sld [smem:[#allocation36_spill]]  ;;  %s3037_s23 = smov [#allocation14]  }
  0x57   : > { %s536_s29 = sshll.u32 %s3037_s23, 4  ;;  %s537_s29 = int_to_ptr.vmem [resolvable:$true] %s536_s29 }
  0x58   : > { %s2873_s21 = scalar_lea.vmem %s537_s29, 512  ;;  %p2881_p10 = scmp.lt.s32.totalorder %s537_s29, %s537_s29 }
  0x59   : > { %p2874_p5 = scmp.ne.s32.totalorder %s537_s29, %s2873_s21  ;;  %p2882_p11 = scmp.lt.s32.totalorder %s2873_s21, %s2873_s21 }
  0x5b   : > { %p2876_p8 = pnand %p2874_p5, %p3192_p7  ;;  %p2883_p12 = por %p2882_p11, %p2881_p10 }
  0x5c   : > { %2609 = dma.hbm_to_vmem [thread:$0]  (!%p3182_p6), %s3763_s10, 512, %s518_s4, [#allocation12], %s3033_s28, %s3033_s28, %s3034_s18  }
  0x5d   : > { %p2877_p9 = pneg %p2876_p8 }
  0x5f   : > { %p2884_p0 = pnand %p2883_p12, %p2877_p9 }
  0x61   : > { %2887 = shalt.err (!%p2884_p0)
}
  0x62   : > { %s3764_s13 = sld [smem:[#allocation37_spill]]  ;;  %s2295_s1 = sadd.s32 4294967294, %s3028_s27  }
  0x63   : > { %s3268_s22 = sadd.s32 1, %s3028_s27   ;;  %s46_s19 = sadd.s32 1, %s3024_s26 }
  0x64   : > { %3765 = sst [smem:[#allocation26_spill]] %s3268_s22  ;;  %s43_s20 = ssub.s32 %s3028_s27, %s3268_s22 }
  0x65   : > { %p44_p7 = scmp.eq.s32.totalorder %s43_s20, 0  ;;  %p53_p13 = scmp.ne.s32.totalorder %s3024_s26, %s3020_s25 }
  0x66   : > { %p54_p2 = scmp.eq.s32.totalorder %s3028_s27, 0  ;;  %p59_p5 = scmp.ne.s32.totalorder %s3020_s25, %s3016_s24 }
  0x67   : > { %s3279_s17 = scalar_select %p44_p7, %s3024_s26, %s46_s19  }
  0x68   : > { %2612 = dma.hbm_to_vmem [thread:$0]  (!%p3182_p6), %s3764_s13, 512, %s537_s29, [#allocation15], %s3033_s28, %s3033_s28, %s3034_s18  }
  0x69   : > { %3766 = sst [smem:[#allocation27_spill]] %s3279_s17  ;;  %p3281_p8 = por %p54_p2, %p53_p13 }
  0x6a   : > { %p3287_p6 = por %p3739_p1, %p59_p5  ;;  %p434_p9 = scmp.eq.s32.totalorder %s3168_s0, 1 }
  0x6b   : > { %p440_p10 = scmp.eq.s32.totalorder %s2295_s1, 1  ;;  %p2630_p11 = scmp.lt.s32.totalorder %s3028_s27, 2 }
  0x6c   : > { %s3768_s28 = scalar_select %p3287_p6, 1, 0 }
  0x6d   : > { %s559_s18 = sand.u32 1, %s3024_s26   ;;  %p3294_p12 = por %p434_p9, %p53_p13 }
  0x6e   : > { %p3298_p0 = por %p440_p10, %p59_p5  ;;  %s3302_s16 = sshll.u32 %s559_s18, 3 }
  0x6f   : > { %s3769_s29 = scalar_select %p3294_p12, 1, 0 }
  0x70   : > { %s3771_s21 = scalar_select %p3298_p0, 1, 0 }
  0x71   : > { %3770 = sst [smem:[#allocation28_spill]] %s3769_s29  ;;  %s2305_s4 = sshll.u32 %s3028_s27, 7 }
  0x72   : > { %3772 = sst [smem:[#allocation29_spill]] %s3771_s21  ;;  %s563_s1 = scalar_lea.vmem [#allocation2], %s3302_s16 }
  0x73   : > { %s3773_s5 = sld [smem:[#allocation30_spill]]  ;;  %s570_s9 = sshll.u32 %s563_s1, 4  ;;  %s3311_s9 = int_to_ptr.vmem [resolvable:$true] %s570_s9 }
  0x74   : > { %p3315_p7 = pnand %p2630_p11, %p3281_p8  ;;  %s3775_s26 = sld [smem:[#allocation31_spill]] }
  0x75   : > { %s577_s19 = sand.u32 1, %s3028_s27   ;;  %s560_s21 = scalar_lea.sflag [#allocation3], %s559_s18 }
  0x76   : > { %p2890_p2 = pneg %p3315_p7 }
  0x79   : > { %s3308_s8 = scalar_lea.hbm %s3773_s5, %s2305_s4  ;;  %s2893_s15 = scalar_lea.hbm %s3773_s5, 256 }
  0x7a   : > { %s3776_s22 = smov %s3775_s26  ;;  %s3322_s20 = scalar_lea.hbm %s3775_s26, %s2305_s4 }
  0x7b   : > { %s2888_s24 = scalar_lea.hbm %s3308_s8, 128  ;;  %p2894_p9 = scmp.lt.s32.totalorder %s3308_s8, %s3773_s5 }
  0x7c   : > { %p2889_p13 = scmp.ne.s32.totalorder %s3308_s8, %s2888_s24  ;;  %p2895_p10 = scmp.lt.s32.totalorder %s2893_s15, %s2888_s24 }
  0x7e   : > { %p2891_p5 = pnand %p2890_p2, %p2889_p13  ;;  %p2896_p11 = por %p2895_p10, %p2894_p9 }
  0x80   : > { %p2892_p8 = pneg %p2891_p5 }
  0x82   : > { %p2897_p4 = pnand %p2896_p11, %p2892_p8 }
  0x84   : > { %2900 = shalt.err (!%p2897_p4)
}
  0x85   : > { %s2901_s26 = scalar_lea.vmem %s3311_s9, 128  ;;  %s3038_s17 = smov [#allocation2]  }
  0x86   : > { %p2902_p1 = scmp.ne.s32.totalorder %s3311_s9, %s2901_s26  ;;  %s2906_s18 = sshll.u32 %s3038_s17, 4  ;;  %s2907_s18 = int_to_ptr.vmem [resolvable:$false] %s2906_s18 }
  0x87   : > { %s2908_s4 = scalar_lea.vmem %s2907_s18, 256  ;;  %p2909_p0 = scmp.lt.s32.totalorder %s3311_s9, %s2907_s18 }
  0x88   : > { %p2904_p13 = pnand %p2902_p1, %p2890_p2  ;;  %p2910_p12 = scmp.lt.s32.totalorder %s2908_s4, %s2901_s26 }
  0x8a   : > { %p2905_p5 = pneg %p2904_p13  ;;  %p2911_p6 = por %p2910_p12, %p2909_p0 }
  0x8c   : > { %p2912_p9 = pnand %p2911_p6, %p2905_p5 }
  0x8e   : > { %2915 = shalt.err (!%p2912_p9)
}
  0x8f   : > { %2616 = dma.hbm_to_vmem [thread:$0]  (!%p3315_p7), %s3308_s8, 128, %s3311_s9, %s560_s21  }
  0x90   : > { %s581_s15 = scalar_lea.vmem [#allocation5], %s3302_s16  ;;  %s578_s29 = scalar_lea.sflag [#allocation6], %s577_s19 }
  0x91   : > { %s588_s24 = sshll.u32 %s581_s15, 4  ;;  %s2916_s23 = scalar_lea.hbm %s3322_s20, 128  ;;  %s589_s24 = int_to_ptr.vmem [resolvable:$true] %s588_s24 }
  0x92   : > { %p2917_p1 = scmp.ne.s32.totalorder %s3322_s20, %s2916_s23  ;;  %s2921_s26 = scalar_lea.hbm %s3776_s22, 256 }
  0x93   : > { %p2922_p12 = scmp.lt.s32.totalorder %s3322_s20, %s3776_s22  ;;  %p2923_p0 = scmp.lt.s32.totalorder %s2921_s26, %s2916_s23 }
  0x94   : > { %p2919_p4 = pnand %p2917_p1, %p2890_p2 }
  0x95   : > { %p2924_p8 = por %p2923_p0, %p2922_p12 }
  0x96   : > { %p2920_p6 = pneg %p2919_p4 }
  0x98   : > { %p2925_p10 = pnand %p2924_p8, %p2920_p6 }
  0x9a   : > { %2928 = shalt.err (!%p2925_p10)
}
  0x9b   : > { %s2929_s8 = scalar_lea.vmem %s589_s24, 128  ;;  %s3039_s9 = smov [#allocation5]  }
  0x9c   : > { %p2930_p11 = scmp.ne.s32.totalorder %s589_s24, %s2929_s8  ;;  %s2934_s21 = sshll.u32 %s3039_s9, 4  ;;  %s2935_s21 = int_to_ptr.vmem [resolvable:$false] %s2934_s21 }
  0x9d   : > { %s2936_s16 = scalar_lea.vmem %s2935_s21, 256  ;;  %p2937_p9 = scmp.lt.s32.totalorder %s589_s24, %s2935_s21 }
  0x9e   : > { %p2932_p13 = pnand %p2930_p11, %p2890_p2  ;;  %p2938_p1 = scmp.lt.s32.totalorder %s2936_s16, %s2929_s8 }
  0xa0   : > { %p2933_p5 = pneg %p2932_p13  ;;  %p2939_p4 = por %p2938_p1, %p2937_p9 }
  0xa2   : > { %p2940_p3 = pnand %p2939_p4, %p2933_p5 }
  0xa4   : > { %2943 = shalt.err (!%p2940_p3)
}
  0xa5   : > { %2619 = dma.hbm_to_vmem [thread:$0]  (!%p3315_p7), %s3322_s20, 128, %s589_s24, %s578_s29  }
  0xa6   : > { %p3777_p6 = scmp.ne.s32.totalorder %s3756_s30, 0 }
  0xa7   : > { %s3373_s19 = sand.u32 (!%p3777_p6), 1, %s3020_s25   ;;  %p3778_p2 = scmp.ne.s32.totalorder (!%p3777_p6), %s3768_s28, 0 }
  0xa8   : > { %611 = sbr.rel (%p3777_p6) target bundleno = 4276 (0x10b4), region = 88  ;;  %s3376_s4 = sshll.u32 (!%p3777_p6), %s3373_s19, 3 }
  0xa9   : > { %s614_s15 = scalar_lea.sflag (!%p3777_p6), [#allocation3], %s3373_s19  ;;  %s617_s23 = scalar_lea.vmem (!%p3777_p6), [#allocation2], %s3376_s4 }
  0xad   : > { %2987 = dma.done.wait (%p3778_p2), %s614_s15, 128  }
  0xae   : > { %2989 = vsyncadd (%p3778_p2), %s614_s15, 4294967168  ;;  %s622_s10 = sand.u32 1, %s3168_s0   ;;  %s626_s20 = scalar_lea.vmem [#allocation5], %s3376_s4 }
  0xaf   : > { %s623_s30 = scalar_lea.sflag [#allocation6], %s622_s10 }
  0xb0   : > { %2991 = dma.done.wait (%p3778_p2), %s623_s30, 128  }
  0xb1   : > { %2993 = vsyncadd (%p3778_p2), %s623_s30, 4294967168  ;;  %p3779_p3 = scmp.eq.s32.totalorder %s3168_s0, 0 }
  0xb3   : > { %2995 = dma.done.wait (%p3779_p3), [#allocation6], 512   ;;  %p3780_p7 = pmov %p3779_p3 }
  0xb4   : > { %p3781_p12 = pmov %p3779_p3 }
  0xb5   : > { %2997 = vsyncadd (%p3780_p7), [#allocation6], 4294966784 }
  0xb6   : > { %2999 = dma.done.wait (%p3781_p12), [#allocation9], 1024   ;;  %p3782_p0 = pmov %p3779_p3 }
  0xb8   : > { %3001 = vsyncadd (%p3782_p0), [#allocation9], 4294966272  ;;  %p3783_p8 = pmov %p3782_p0 }
  0xb9   : > { %p3784_p10 = pmov %p3782_p0 }
  0xba   : > { %3003 = dma.done.wait (%p3783_p8), [#allocation12], 1024  }
  0xbb   : > { %3005 = vsyncadd (%p3784_p10), [#allocation12], 4294966272  ;;  %p3785_p11 = pmov %p3782_p0 }
  0xbc   : > { %p3786_p13 = pmov %p3782_p0 }
  0xbd   : > { %3007 = dma.done.wait (%p3785_p11), [#allocation15], 512  }
  0xbe   : > { %3009 = vsyncadd (%p3786_p13), [#allocation15], 4294966784  ;;  %v3040_v0 = vmov 0.0   ;;  %vm3041_vm0 = vmmov 0   ;;  %v729_v1 = vld [vmem:[#allocation7 + $0x10] sm:$0xff]  ;;  %v730_v2 = vld [vmem:[#allocation7 + $0x18] sm:$0xff] }
  0xbf   : > { %2408 = vmatprep.subr.bf16.mxu1 %v3040_v0  ;;  %2412 = vmatprep.mubr.msk.bf16.mxu1 %vm3041_vm0, %v3040_v0  ;;  %v727_v3 = vld [vmem:[#allocation7] sm:$0xff]  ;;  %v733_v4 = vpack.c.bf16 %v730_v2, %v729_v1  ;;  %v728_v5 = vld [vmem:[#allocation7 + $0x8] sm:$0xff]  ;;  %vm734_vm1 = vcmask 261120   ;;  %s3042_s28 = smov 120   ;;  %s3043_s24 = smov 96   ;;  %vm783_vm2 = vcmask 64512  }
  0xc0   : > { %2422 = vmatprep.subr.bf16.mxu0 %v3040_v0  ;;  %2424 = vmatprep.mubr.msk.bf16.mxu0 %vm3041_vm0, %v3040_v0  ;;  %v732_v6 = vpack.c.bf16 %v728_v5, %v727_v3  ;;  %v3412_v7 = vld [vmem:[%s617_s23] sm:$0xff]  ;;  %s3044_s29 = smov 80   ;;  %s3045_s1 = smov 88   ;;  %vm849_vm4 = vcmask 1043456   ;;  %vm1242_vm5 = vcmask 130048   ;;  %vm1244_vm6 = vcmask 195584  }
  0xc1   : > { %2409 = vmatpush3.bf16.msra.mxu1 %v733_v4  ;;  %v731_v8 = vpack.c.bf16 %v3412_v7, %v3412_v7  ;;  %s3046_s13 = smov 72   ;;  %s3047_s26 = smov 112   ;;  %vm2033_vm8 = vcmask 523264  }
  0xc2   : > { %2410 = vmatprep.subr.bf16.mxu1 %v3040_v0  ;;  %s3048_s17 = smov 104   ;;  %p714_p5 = scmp.lt.s32.totalorder %s3168_s0, 1 }
  0xc3   : > { %s3049_s15 = smov 56   ;;  %s3050_s23 = smov 64  }
  0xc4   : > { %s3460_s18 = scalar_select %p714_p5, %s3168_s0, 1 }
  0xc5   : > { %2411 = vmatpush3.bf16.msra.mxu1 %v732_v6  ;;  %s3051_s10 = smov 40   ;;  %s3052_s30 = smov 48  }
  0xc6   : > { %2416 = vmatprep.subr.bf16.mxu1 %v3040_v0  ;;  %s2318_s8 = sshll.u32 %s3460_s18, 3  ;;  %s3053_s9 = smov 8  }
  0xc7   : > { %s717_s16 = scalar_lea.vmem %s3713_s2, %s2318_s8  ;;  %s3054_s21 = smov 16  }
  0xc8   : > { %2413 = vmatmul.mubr.msk.bf16.vlgmr.msra.gmra.mxu1 %vm734_vm1, %v731_v8  ;;  %v725_v25 = vld [vmem:[%s717_s16] sm:$0xff]  ;;  %s3055_s16 = smov 24   ;;  %s3056_s18 = smov [#allocation16]  }
  0xc9   : > { %2418 = vmatprep.mubr.msk.bf16.mxu1 %vm3041_vm0, %v3040_v0  ;;  %vm778_vm3 = vcmp.ne.s32.totalorder %v725_v25, 0 }
 0x188   : > { %v772_v9 = vpop.f32.mrf.mxu1 }
 0x189   : > { %v3421_v10 = vpack.c.bf16 %v772_v9, %v772_v9 }
 0x18a   : > { %v2414_v11 = vpop.f32.mrf.mxu1 }
 0x18b   : > { %893 = vrot.lane.b32.xlu1 %v3421_v10, %s3042_s28  ;;  %781 = vrot.lane.b32.xlu0 %v3421_v10, %s3043_s24 }
 0x18c   : > { %v775_v12 = vpop.f32.mrf.mxu1 }
 0x18e   : > { %v2415_v13 = vpop.f32.mrf.mxu1 }
 0x18f   : > { %1007 = vrot.lane.b32.xlu1 %v3421_v10, %s3044_s29  ;;  %895 = vrot.lane.b32.xlu0 %v3421_v10, %s3045_s1 }
 0x193   : > { %1119 = vrot.lane.b32.xlu1 %v3421_v10, %s3046_s13  ;;  %1005 = vrot.lane.b32.xlu0 %v3421_v10, %s3047_s26 }
 0x197   : > { %1117 = vrot.lane.b32.xlu0 %v3421_v10, %s3048_s17 }
 0x1fd   : > { %v782_v14 = vpop.permute.xlu0 %781  ;;  %v894_v17 = vpop.permute.xlu1 %893 }
 0x1fe   : > { %v788_v15 = vsel %vm783_vm2, %v782_v14, 0 }
 0x1ff   : > { %2417 = vmatpush3.bf16.xpose.msra.mxu1 %v788_v15 }
 0x200   : > { %2428 = vmatprep.subr.bf16.mxu1 %v3040_v0 }
 0x201   : > { %v896_v16 = vpop.permute.xlu0 %895  ;;  %v1008_v19 = vpop.permute.xlu1 %1007 }
 0x202   : > { %v901_v18 = vsel %vm783_vm2, %v896_v16, 0  ;;  %v1013_v20 = vsel %vm783_vm2, %v1008_v19, 0 }
 0x205   : > { %v1120_v21 = vpop.permute.xlu1 %1119  ;;  %v1006_v22 = vpop.permute.xlu0 %1005 }
 0x206   : > { %2419 = vmatmul.mubr.msk.bf16.vlgmr.msra.gmra.mxu1 %vm783_vm2, %v3421_v10  ;;  %v1125_v23 = vsel %vm783_vm2, %v1120_v21, 0 }
 0x207   : > { %2429 = vmatpush3.bf16.xpose.msra.mxu1 %v901_v18  ;;  %2430 = vmatprep.mubr.msk.bf16.mxu1 %vm3041_vm0, %v3040_v0 }
 0x208   : > { %2440 = vmatprep.subr.bf16.mxu1 %v3040_v0 }
 0x209   : > { %v1118_v24 = vpop.permute.xlu0 %1117 }
 0x20e   : > { %2431 = vmatmul.mubr.msk.bf16.vlgmr.msra.gmra.mxu1 %vm783_vm2, %v894_v17 }
 0x20f   : > { %2441 = vmatpush3.bf16.xpose.msra.mxu1 %v1013_v20  ;;  %2442 = vmatprep.mubr.msk.bf16.mxu1 %vm3041_vm0, %v3040_v0 }
 0x210   : > { %2452 = vmatprep.subr.bf16.mxu1 %v3040_v0 }
 0x216   : > { %2443 = vmatmul.mubr.msk.bf16.vlgmr.msra.gmra.mxu1 %vm783_vm2, %v1006_v22 }
 0x217   : > { %2453 = vmatpush3.bf16.xpose.msra.mxu1 %v1125_v23  ;;  %2454 = vmatprep.mubr.msk.bf16.mxu1 %vm3041_vm0, %v3040_v0 }
 0x218   : > { %2464 = vmatprep.subr.bf16.mxu1 %v3040_v0 }
 0x21e   : > { %2455 = vmatmul.mubr.msk.bf16.vlgmr.msra.gmra.mxu1 %vm783_vm2, %v1118_v24 }
 0x21f   : > { %2468 = vmatprep.mubr.msk.bf16.mxu1 %vm3041_vm0, %v3040_v0 }
 0x2c6   : > { %v824_v26 = vpop.f32.mrf.mxu1 }
 0x2c7   : > { %v830_v27 = vmul.f32 0.35355338, %v824_v26 }
 0x2c8   : > { %v2420_v28 = vpop.f32.mrf.mxu1 }
 0x2c9   : > { %v831_v29 = vsel %vm778_vm3, -1e+09, %v830_v27 }
 0x2ca   : > { %v827_v30 = vpop.f32.mrf.mxu1  ;;  %v832_v31 = vsel %vm783_vm2, %v831_v29, -inf }
 0x2cb   : > { %833 = vmax.xlane.f32.xlu1 %v832_v31 }
 0x2cc   : > { %v2421_v32 = vpop.f32.mrf.mxu1 }
 0x2ce   : > { %v937_v33 = vpop.f32.mrf.mxu1 }
 0x2cf   : > { %v943_v34 = vmul.f32 0.35355338, %v937_v33 }
 0x2d0   : > { %v2432_v35 = vpop.f32.mrf.mxu1 }
 0x2d1   : > { %v944_v36 = vsel %vm778_vm3, -1e+09, %v943_v34 }
 0x2d2   : > { %v940_v37 = vpop.f32.mrf.mxu1  ;;  %v945_v38 = vsel %vm783_vm2, %v944_v36, -inf }
 0x2d3   : > { %946 = vmax.xlane.f32.xlu0 %v945_v38 }
 0x2d4   : > { %v2433_v39 = vpop.f32.mrf.mxu1 }
 0x2d6   : > { %v1049_v40 = vpop.f32.mrf.mxu1 }
 0x2d7   : > { %v1055_v41 = vmul.f32 0.35355338, %v1049_v40 }
 0x2d8   : > { %v2444_v42 = vpop.f32.mrf.mxu1 }
 0x2d9   : > { %v1056_v43 = vsel %vm778_vm3, -1e+09, %v1055_v41 }
 0x2da   : > { %v1052_v44 = vpop.f32.mrf.mxu1  ;;  %v1057_v45 = vsel %vm783_vm2, %v1056_v43, -inf }
 0x2db   : > { %1058 = vmax.xlane.f32.xlu0 %v1057_v45  ;;  %v1248_v44 = vld [vmem:[#allocation8 + $0x10] sm:$0xff]  ;;  %v1249_v45 = vld [vmem:[#allocation8 + $0x18] sm:$0xff] }
 0x2dc   : > { %v2445_v46 = vpop.f32.mrf.mxu1 }
 0x2dd   : > { %v1252_v46 = vpack.c.bf16 %v1249_v45, %v1248_v44 }
 0x2de   : > { %v1161_v47 = vpop.f32.mrf.mxu1 }
 0x2df   : > { %v1167_v48 = vmul.f32 0.35355338, %v1161_v47  ;;  %2465 = vmatpush3.bf16.msra.mxu1 %v1252_v46  ;;  %v1246_v47 = vld [vmem:[#allocation8] sm:$0xff] }
 0x2e0   : > { %v2456_v49 = vpop.f32.mrf.mxu1  ;;  %2466 = vmatprep.subr.bf16.mxu1 %v3040_v0 }
 0x2e1   : > { %v1168_v50 = vsel %vm778_vm3, -1e+09, %v1167_v48  ;;  %v1247_v48 = vld [vmem:[#allocation8 + $0x8] sm:$0xff] }
 0x2e2   : > { %v1164_v51 = vpop.f32.mrf.mxu1  ;;  %v1169_v52 = vsel %vm783_vm2, %v1168_v50, -inf  ;;  %v1251_v49 = vpack.c.bf16 %v1247_v48, %v1246_v47 }
 0x2e3   : > { %1170 = vmax.xlane.f32.xlu1 %v1169_v52 }
 0x2e4   : > { %v2457_v53 = vpop.f32.mrf.mxu1  ;;  %2467 = vmatpush3.bf16.msra.mxu1 %v1251_v49 }
 0x2e5   : > { %2480 = vmatprep.subr.bf16.mxu1 %v3040_v0 }
 0x354   : > { %v834_v54 = vpop.xlane.xlu1 %833 }
 0x355   : > { %v835_v55 = vsub.f32 %v831_v29, %v834_v54 }
 0x357   : > { %v836_v56 = vmul.f32 1.442695, %v835_v55 }
 0x359   : > { %2694 = vpow2.f32 %v836_v56 }
 0x35c   : > { %v947_v57 = vpop.xlane.xlu0 %946 }
 0x35d   : > { %v948_v58 = vsub.f32 %v944_v36, %v947_v57 }
 0x35f   : > { %v949_v59 = vmul.f32 1.442695, %v948_v58 }
 0x361   : > { %2696 = vpow2.f32 %v949_v59 }
 0x364   : > { %v1059_v60 = vpop.xlane.xlu0 %1058 }
 0x365   : > { %v1060_v61 = vsub.f32 %v1056_v43, %v1059_v60 }
 0x366   : > { %v2695_v62 = vpop.eup %2694 }
 0x367   : > { %v1061_v63 = vmul.f32 1.442695, %v1060_v61  ;;  %v838_v1 = vsel %vm783_vm2, %v2695_v62, 0.0 }
 0x368   : > { %839 = vadd.xlane.f32.xlu0 %v838_v1 }
 0x369   : > { %2698 = vpow2.f32 %v1061_v63 }
 0x36c   : > { %v1171_v6 = vpop.xlane.xlu1 %1170 }
 0x36d   : > { %v1172_v8 = vsub.f32 %v1168_v50, %v1171_v6 }
 0x36e   : > { %v2697_v2 = vpop.eup %2696 }
 0x36f   : > { %v951_v3 = vsel %vm783_vm2, %v2697_v2, 0.0  ;;  %v1173_v9 = vmul.f32 1.442695, %v1172_v8 }
 0x370   : > { %952 = vadd.xlane.f32.xlu1 %v951_v3 }
 0x371   : > { %2700 = vpow2.f32 %v1173_v9 }
 0x376   : > { %v2699_v4 = vpop.eup %2698 }
 0x377   : > { %v1063_v5 = vsel %vm783_vm2, %v2699_v4, 0.0 }
 0x378   : > { %1064 = vadd.xlane.f32.xlu0 %v1063_v5 }
 0x37e   : > { %v2701_v11 = vpop.eup %2700 }
 0x37f   : > { %v1175_v12 = vsel %vm783_vm2, %v2701_v11, 0.0 }
 0x381   : > { %957 = vrot.lane.b32.xlu1 %v3421_v10, %s3049_s15  ;;  %s713_s15 = scalar_lea.vmem [#allocation16], %s3376_s4 }
 0x38e   : > { %844 = vrot.lane.b32.xlu0 %v3421_v10, %s3050_s23  ;;  %s2121_s23 = sshll.u32 %s713_s15, 4  ;;  %s2122_s23 = int_to_ptr.vmem [resolvable:$true] %s2121_s23 }
 0x392   : > { %1181 = vrot.lane.b32.xlu0 %v3421_v10, %s3051_s10 }
 0x3a5   : > { %1176 = vadd.xlane.f32.xlu1 %v1175_v12 }
 0x3b6   : > { %1069 = vrot.lane.b32.xlu1 %v3421_v10, %s3052_s30  ;;  %s3788_s30 = sld [smem:[#allocation38_spill]] }
 0x3f1   : > { %v840_v13 = vpop.xlane.xlu0 %839 }
 0x3f2   : > { %2702 = vrcp.f32 %v840_v13 }
 0x3f9   : > { %v953_v14 = vpop.xlane.xlu1 %952 }
 0x3fa   : > { %2704 = vrcp.f32 %v953_v14 }
 0x3fd   : > { %v958_v20 = vpop.permute.xlu1 %957 }
 0x3fe   : > { %v963_v23 = vsel %vm849_vm4, %v958_v20, 0  ;;  %v724_v20 = vld [vmem:[%s626_s20] sm:$0xff]  ;;  %s2350_s20 = sshll.u32 %s3168_s0, 7 }
 0x3ff   : > { %v2703_v15 = vpop.eup %2702 }
 0x400   : > { %v842_v17 = vmul.f32 %v2703_v15, %v2695_v62  ;;  %v1378_v15 = vld [vmem:[#allocation11 + $0x10] sm:$0xff] }
 0x401   : > { %v1065_v16 = vpop.xlane.xlu0 %1064 }
 0x402   : > { %v843_v21 = vpack.c.bf16 %v842_v17, %v842_v17  ;;  %2706 = vrcp.f32 %v1065_v16  ;;  %v1379_v16 = vld [vmem:[#allocation11 + $0x18] sm:$0xff] }
 0x403   : > { %v1382_v17 = vpack.c.bf16 %v1379_v16, %v1378_v15 }
 0x405   : > { %v845_v18 = vpop.permute.xlu0 %844 }
 0x406   : > { %v851_v19 = vsel %vm849_vm4, %v845_v18, 0  ;;  %v1377_v18 = vld [vmem:[#allocation11 + $0x8] sm:$0xff] }
 0x407   : > { %2423 = vmatpush3.bf16.msra.mxu0 %v851_v19  ;;  %v2705_v22 = vpop.eup %2704 }
 0x408   : > { %2434 = vmatprep.subr.bf16.mxu0 %v3040_v0  ;;  %v955_v10 = vmul.f32 %v2705_v22, %v2697_v2  ;;  %v1328_v22 = vld [vmem:[#allocation10 + $0x10] sm:$0xff] }
 0x409   : > { %v1182_v30 = vpop.permute.xlu0 %1181 }
 0x40a   : > { %2425 = vmatmul.mubr.msk.bf16.vlgmr.msra.gmra.mxu0 %vm783_vm2, %v843_v21  ;;  %v956_v24 = vpack.c.bf16 %v955_v10, %v955_v10  ;;  %v1187_v32 = vsel %vm849_vm4, %v1182_v30, 0  ;;  %v1380_v21 = vpack.c.bf16 %v724_v20, %v724_v20 }
 0x40b   : > { %2435 = vmatpush3.bf16.msra.mxu0 %v963_v23  ;;  %2436 = vmatprep.mubr.msk.bf16.mxu0 %vm3041_vm0, %v3040_v0  ;;  %v1329_v23 = vld [vmem:[#allocation10 + $0x18] sm:$0xff] }
 0x40c   : > { %2446 = vmatprep.subr.bf16.mxu0 %v3040_v0  ;;  %v1332_v10 = vpack.c.bf16 %v1329_v23, %v1328_v22 }
 0x40f   : > { %v2707_v25 = vpop.eup %2706 }
 0x410   : > { %v1067_v27 = vmul.f32 %v2707_v25, %v2699_v4  ;;  %v1327_v25 = vld [vmem:[#allocation10 + $0x8] sm:$0xff] }
 0x412   : > { %2437 = vmatmul.mubr.msk.bf16.vlgmr.msra.gmra.mxu0 %vm783_vm2, %v956_v24  ;;  %v1068_v31 = vpack.c.bf16 %v1067_v27, %v1067_v27  ;;  %v1326_v24 = vld [vmem:[#allocation10] sm:$0xff] }
 0x413   : > { %2448 = vmatprep.mubr.msk.bf16.mxu0 %vm3041_vm0, %v3040_v0 }
 0x42e   : > { %v1177_v26 = vpop.xlane.xlu1 %1176 }
 0x42f   : > { %2708 = vrcp.f32 %v1177_v26  ;;  %v1331_v26 = vpack.c.bf16 %v1327_v25, %v1326_v24 }
 0x432   : > { %v1070_v28 = vpop.permute.xlu1 %1069 }
 0x433   : > { %v1075_v29 = vsel %vm849_vm4, %v1070_v28, 0 }
 0x434   : > { %2447 = vmatpush3.bf16.msra.mxu0 %v1075_v29 }
 0x435   : > { %2458 = vmatprep.subr.bf16.mxu0 %v3040_v0 }
 0x437   : > { %2449 = vmatmul.mubr.msk.bf16.vlgmr.msra.gmra.mxu0 %vm783_vm2, %v1068_v31  ;;  %v2330_v31 = vld [vmem:[%s3717_s6] ss:$0 sm:$0xff] }
 0x438   : > { %2459 = vmatpush3.bf16.msra.mxu0 %v1187_v32  ;;  %2460 = vmatprep.mubr.msk.bf16.mxu0 %vm3041_vm0, %v3040_v0 }
 0x439   : > { %2472 = vmatprep.subr.bf16.mxu0 %v3040_v0 }
 0x43c   : > { %v2709_v33 = vpop.eup %2708 }
 0x43d   : > { %v1179_v34 = vmul.f32 %v2709_v33, %v2701_v11  ;;  %v2331_v33 = vld [vmem:[%s3718_s7] ss:$0 sm:$0xff] }
 0x43f   : > { %v1180_v35 = vpack.c.bf16 %v1179_v34, %v1179_v34 }
 0x441   : > { %2461 = vmatmul.mubr.msk.bf16.vlgmr.msra.gmra.mxu0 %vm783_vm2, %v1180_v35 }
 0x442   : > { %2476 = vmatprep.mubr.msk.bf16.mxu0 %vm3041_vm0, %v3040_v0  ;;  %2473 = vmatpush3.bf16.msra.mxu0 %v1332_v10 }
 0x443   : > { %2474 = vmatprep.subr.bf16.mxu0 %v3040_v0 }
 0x446   : > { %2475 = vmatpush3.bf16.msra.mxu0 %v1331_v26 }
 0x447   : > { %2488 = vmatprep.subr.bf16.mxu0 %v3040_v0 }
 0x4ca   : > { %v887_v36 = vpop.f32.mrf.mxu0 }
 0x4cc   : > { %v2426_v37 = vpop.f32.mrf.mxu0 }
 0x4ce   : > { %v890_v38 = vpop.f32.mrf.mxu0 }
 0x4d0   : > { %v2427_v39 = vpop.f32.mrf.mxu0 }
 0x4d2   : > { %v999_v40 = vpop.f32.mrf.mxu0 }
 0x4d3   : > { %1230 = vrot.lane.b32.xlu1 %v999_v40, %s3053_s9 }
 0x4d4   : > { %v2438_v41 = vpop.f32.mrf.mxu0 }
 0x4d6   : > { %v1002_v42 = vpop.f32.mrf.mxu0 }
 0x4d8   : > { %v2439_v43 = vpop.f32.mrf.mxu0 }
 0x4f7   : > { %v1111_v50 = vpop.f32.mrf.mxu0 }
 0x4f8   : > { %1234 = vrot.lane.b32.xlu0 %v1111_v50, %s3054_s21 }
 0x4f9   : > { %v2450_v51 = vpop.f32.mrf.mxu0 }
 0x4fb   : > { %v1114_v52 = vpop.f32.mrf.mxu0 }
 0x4fd   : > { %v2451_v53 = vpop.f32.mrf.mxu0 }
 0x501   : > { %v1223_v54 = vpop.f32.mrf.mxu0 }
 0x502   : > { %1238 = vrot.lane.b32.xlu1 %v1223_v54, %s3055_s16 }
 0x503   : > { %v2462_v55 = vpop.f32.mrf.mxu0 }
 0x505   : > { %v1226_v56 = vpop.f32.mrf.mxu0 }
 0x507   : > { %v2463_v57 = vpop.f32.mrf.mxu0 }
 0x545   : > { %v1231_v58 = vpop.permute.xlu1 %1230 }
 0x546   : > { %v1241_v60 = vsel %vm783_vm2, %v887_v36, %v1231_v58 }
 0x56a   : > { %v1235_v59 = vpop.permute.xlu0 %1234 }
 0x56b   : > { %v1243_v61 = vsel %vm1242_vm5, %v1241_v60, %v1235_v59 }
 0x574   : > { %v1239_v62 = vpop.permute.xlu1 %1238 }
 0x575   : > { %v1245_v63 = vsel %vm1244_vm6, %v1243_v61, %v1239_v62 }
 0x576   : > { %v1250_v1 = vpack.c.bf16 %v1245_v63, %v1245_v63 }
 0x578   : > { %2469 = vmatmul.mubr.msk.bf16.vlgmr.msra.gmra.mxu1 %vm734_vm1, %v1250_v1 }
 0x579   : > { %2484 = vmatprep.mubr.msk.bf16.mxu1 %vm3041_vm0, %v3040_v0  ;;  %2481 = vmatpush3.bf16.msra.mxu1 %v1382_v17 }
 0x57a   : > { %2482 = vmatprep.subr.bf16.mxu1 %v3040_v0 }
 0x638   : > { %v1290_v2 = vpop.f32.mrf.mxu1 }
 0x639   : > { %v1291_v3 = vadd.f32 %v1290_v2, %v3412_v7  ;;  %v1376_v7 = vld [vmem:[#allocation11] sm:$0xff] }
 0x63a   : > { %v2470_v4 = vpop.f32.mrf.mxu1  ;;  %v1381_v19 = vpack.c.bf16 %v1377_v18, %v1376_v7 }
 0x63b   : > { %v1298_v5 = vsel %vm734_vm1, %v1291_v3, 0.0 }
 0x63c   : > { %1299 = vadd.xlane.f32.xlu0 %v1298_v5  ;;  %v1293_v6 = vpop.f32.mrf.mxu1  ;;  %2483 = vmatpush3.bf16.msra.mxu1 %v1381_v19 }
 0x63d   : > { %2494 = vmatprep.subr.bf16.mxu1 %v3040_v0 }
 0x63e   : > { %v2471_v8 = vpop.f32.mrf.mxu1 }
 0x63f   : > { %2485 = vmatmul.mubr.msk.bf16.vlgmr.msra.gmra.mxu1 %vm734_vm1, %v1380_v21 }
 0x640   : > { %2496 = vmatprep.mubr.msk.bf16.mxu1 %vm3041_vm0, %v3040_v0 }
 0x6c5   : > { %v1300_v9 = vpop.xlane.xlu0 %1299 }
 0x6c6   : > { %v1302_v11 = vmul.f32 0.03125, %v1300_v9 }
 0x6c8   : > { %v1303_v12 = vsub.f32 %v1291_v3, %v1302_v11 }
 0x6ca   : > { %v1304_v13 = vmul.f32 %v1303_v12, %v1303_v12 }
 0x6cc   : > { %v1305_v14 = vsel %vm734_vm1, %v1304_v13, 0.0 }
 0x6cd   : > { %1306 = vadd.xlane.f32.xlu1 %v1305_v14 }
 0x6ff   : > { %v1420_v37 = vpop.f32.mrf.mxu1 }
 0x700   : > { %v3540_v38 = vpack.c.bf16 %v1420_v37, %v1420_v37 }
 0x701   : > { %v2486_v39 = vpop.f32.mrf.mxu1 }
 0x702   : > { %1541 = vrot.lane.b32.xlu0 %v3540_v38, %s3042_s28  ;;  %v1433_v40 = vsel %vm783_vm2, %v3540_v38, 0 }
 0x703   : > { %v1423_v41 = vpop.f32.mrf.mxu1 }
 0x705   : > { %v2487_v42 = vpop.f32.mrf.mxu1 }
 0x706   : > { %1653 = vrot.lane.b32.xlu0 %v3540_v38, %s3047_s26 }
 0x70a   : > { %1765 = vrot.lane.b32.xlu0 %v3540_v38, %s3048_s17 }
 0x756   : > { %v1307_v27 = vpop.xlane.xlu1 %1306 }
 0x757   : > { %v1308_v28 = vmul.f32 0.03125, %v1307_v27 }
 0x759   : > { %v1309_v29 = vadd.f32 1e-05, %v1308_v28 }
 0x75b   : > { %2710 = vrsqrt.f32 %v1309_v29 }
 0x768   : > { %v2711_v30 = vpop.eup %2710 }
 0x769   : > { %v1311_v32 = vmul.f32 %v2711_v30, %v1303_v12 }
 0x76b   : > { %v1318_v34 = vmul.f32 %v2330_v31, %v1311_v32 }
 0x76d   : > { %v3533_v35 = vadd.f32 %v2331_v33, %v1318_v34 }
 0x76f   : > { %v1330_v36 = vpack.c.bf16 %v3533_v35, %v3533_v35 }
 0x771   : > { %2477 = vmatmul.mubr.msk.bf16.vlgmr.msra.gmra.mxu0 %vm734_vm1, %v1330_v36 }
 0x772   : > { %2490 = vmatprep.mubr.msk.bf16.mxu0 %vm3041_vm0, %v3040_v0  ;;  %2489 = vmatpush3.bf16.xpose.msra.mxu0 %v1433_v40 }
 0x773   : > { %2500 = vmatprep.subr.bf16.mxu0 %v3040_v0 }
 0x774   : > { %v1542_v44 = vpop.permute.xlu0 %1541 }
 0x775   : > { %v1547_v46 = vsel %vm783_vm2, %v1542_v44, 0 }
 0x778   : > { %v1654_v50 = vpop.permute.xlu0 %1653 }
 0x779   : > { %v1659_v52 = vsel %vm783_vm2, %v1654_v50, 0 }
 0x77c   : > { %v1766_v53 = vpop.permute.xlu0 %1765 }
 0x77d   : > { %v1771_v55 = vsel %vm783_vm2, %v1766_v53, 0 }
 0x831   : > { %v1370_v43 = vpop.f32.mrf.mxu0 }
 0x832   : > { %v1427_v45 = vpack.c.bf16 %v1370_v43, %v1370_v43 }
 0x833   : > { %v2478_v47 = vpop.f32.mrf.mxu0 }
 0x834   : > { %1539 = vrot.lane.b32.xlu1 %v1427_v45, %s3042_s28  ;;  %2491 = vmatmul.mubr.msk.bf16.vlgmr.msra.gmra.mxu0 %vm783_vm2, %v1427_v45 }
 0x835   : > { %v1373_v48 = vpop.f32.mrf.mxu0  ;;  %2501 = vmatpush3.bf16.xpose.msra.mxu0 %v1547_v46  ;;  %2502 = vmatprep.mubr.msk.bf16.mxu0 %vm3041_vm0, %v3040_v0 }
 0x836   : > { %2512 = vmatprep.subr.bf16.mxu0 %v3040_v0 }
 0x837   : > { %v2479_v49 = vpop.f32.mrf.mxu0 }
 0x838   : > { %1651 = vrot.lane.b32.xlu1 %v1427_v45, %s3047_s26  ;;  %s3790_s26 = sld [smem:[#allocation40_spill]] }
 0x83c   : > { %1763 = vrot.lane.b32.xlu1 %v1427_v45, %s3048_s17  ;;  %s721_s17 = scalar_lea.vmem %s3714_s3, %s2318_s8  ;;  %s2948_s8 = sshll.u32 %s3056_s18, 4  ;;  %s2949_s8 = int_to_ptr.vmem [resolvable:$false] %s2948_s8 }
 0x83d   : > { %v726_v57 = vld [vmem:[%s721_s17] sm:$0xff]  ;;  %s2950_s0 = scalar_lea.vmem %s2949_s8, 256  ;;  %p2951_p2 = scmp.lt.s32.totalorder %s2122_s23, %s2949_s8 }
 0x83e   : > { %vm1426_vm7 = vcmp.ne.s32.totalorder %v726_v57, 0  ;;  %s3791_s17 = smov %s3790_s26 }
 0x8a6   : > { %v1540_v51 = vpop.permute.xlu1 %1539 }
 0x8a7   : > { %2503 = vmatmul.mubr.msk.bf16.vlgmr.msra.gmra.mxu0 %vm783_vm2, %v1540_v51 }
 0x8a8   : > { %2513 = vmatpush3.bf16.xpose.msra.mxu0 %v1659_v52  ;;  %2514 = vmatprep.mubr.msk.bf16.mxu0 %vm3041_vm0, %v3040_v0 }
 0x8a9   : > { %2524 = vmatprep.subr.bf16.mxu0 %v3040_v0 }
 0x8aa   : > { %v1652_v54 = vpop.permute.xlu1 %1651 }
 0x8ae   : > { %v1764_v56 = vpop.permute.xlu1 %1763 }
 0x8af   : > { %2515 = vmatmul.mubr.msk.bf16.vlgmr.msra.gmra.mxu0 %vm783_vm2, %v1652_v54 }
 0x8b0   : > { %2525 = vmatpush3.bf16.xpose.msra.mxu0 %v1771_v55  ;;  %2526 = vmatprep.mubr.msk.bf16.mxu0 %vm3041_vm0, %v3040_v0 }
 0x8b1   : > { %2536 = vmatprep.subr.bf16.mxu0 %v3040_v0 }
 0x8b7   : > { %2527 = vmatmul.mubr.msk.bf16.vlgmr.msra.gmra.mxu0 %vm783_vm2, %v1764_v56 }
 0x8b8   : > { %2540 = vmatprep.mubr.msk.bf16.mxu0 %vm3041_vm0, %v3040_v0 }
 0x8f4   : > { %v1469_v58 = vpop.f32.mrf.mxu0 }
 0x8f5   : > { %v1475_v59 = vmul.f32 0.35355338, %v1469_v58 }
 0x8f6   : > { %v2492_v60 = vpop.f32.mrf.mxu0 }
 0x8f7   : > { %v1476_v61 = vsel %vm1426_vm7, -1e+09, %v1475_v59 }
 0x8f8   : > { %v1472_v62 = vpop.f32.mrf.mxu0  ;;  %v1477_v63 = vsel %vm783_vm2, %v1476_v61, -inf }
 0x8f9   : > { %1478 = vmax.xlane.f32.xlu0 %v1477_v63 }
 0x8fa   : > { %v2493_v1 = vpop.f32.mrf.mxu0 }
 0x967   : > { %v1583_v2 = vpop.f32.mrf.mxu0 }
 0x968   : > { %v1589_v3 = vmul.f32 0.35355338, %v1583_v2 }
 0x969   : > { %v2504_v4 = vpop.f32.mrf.mxu0 }
 0x96a   : > { %v1590_v5 = vsel %vm1426_vm7, -1e+09, %v1589_v3 }
 0x96b   : > { %v1586_v6 = vpop.f32.mrf.mxu0  ;;  %v1591_v8 = vsel %vm783_vm2, %v1590_v5, -inf }
 0x96c   : > { %1592 = vmax.xlane.f32.xlu1 %v1591_v8 }
 0x96d   : > { %v2505_v9 = vpop.f32.mrf.mxu0 }
 0x96f   : > { %v1695_v11 = vpop.f32.mrf.mxu0 }
 0x970   : > { %v1701_v12 = vmul.f32 0.35355338, %v1695_v11  ;;  %v1892_v11 = vld [vmem:[#allocation13 + $0x10] sm:$0xff] }
 0x971   : > { %v2516_v13 = vpop.f32.mrf.mxu0 }
 0x972   : > { %v1702_v14 = vsel %vm1426_vm7, -1e+09, %v1701_v12  ;;  %v1893_v12 = vld [vmem:[#allocation13 + $0x18] sm:$0xff] }
 0x973   : > { %v1698_v15 = vpop.f32.mrf.mxu0  ;;  %v1703_v16 = vsel %vm783_vm2, %v1702_v14, -inf  ;;  %v1896_v13 = vpack.c.bf16 %v1893_v12, %v1892_v11 }
 0x974   : > { %1704 = vmax.xlane.f32.xlu0 %v1703_v16  ;;  %v1890_v16 = vld [vmem:[#allocation13] sm:$0xff] }
 0x975   : > { %v2517_v17 = vpop.f32.mrf.mxu0  ;;  %2537 = vmatpush3.bf16.msra.mxu0 %v1896_v13 }
 0x976   : > { %2538 = vmatprep.subr.bf16.mxu0 %v3040_v0  ;;  %v1891_v17 = vld [vmem:[#allocation13 + $0x8] sm:$0xff] }
 0x977   : > { %v1807_v7 = vpop.f32.mrf.mxu0 }
 0x978   : > { %v1813_v18 = vmul.f32 0.35355338, %v1807_v7  ;;  %v1895_v7 = vpack.c.bf16 %v1891_v17, %v1890_v16 }
 0x979   : > { %v2528_v19 = vpop.f32.mrf.mxu0 }
 0x97a   : > { %v1814_v20 = vsel %vm1426_vm7, -1e+09, %v1813_v18  ;;  %2539 = vmatpush3.bf16.msra.mxu0 %v1895_v7 }
 0x97b   : > { %v1810_v21 = vpop.f32.mrf.mxu0  ;;  %v1815_v22 = vsel %vm783_vm2, %v1814_v20, -inf  ;;  %2552 = vmatprep.subr.bf16.mxu0 %v3040_v0 }
 0x97c   : > { %1816 = vmax.xlane.f32.xlu0 %v1815_v22 }
 0x97d   : > { %v2529_v23 = vpop.f32.mrf.mxu0 }
 0x982   : > { %v1479_v10 = vpop.xlane.xlu0 %1478 }
 0x983   : > { %v1480_v24 = vsub.f32 %v1476_v61, %v1479_v10 }
 0x985   : > { %v1481_v25 = vmul.f32 1.442695, %v1480_v24 }
 0x987   : > { %2712 = vpow2.f32 %v1481_v25 }
 0x994   : > { %v2713_v26 = vpop.eup %2712 }
 0x995   : > { %v1483_v27 = vsel %vm783_vm2, %v2713_v26, 0.0 }
 0x996   : > { %1484 = vadd.xlane.f32.xlu1 %v1483_v27 }
 0x9a7   : > { %1490 = vrot.lane.b32.xlu1 %v3540_v38, %s3043_s24  ;;  %s2119_s24 = scalar_lea.hbm %s3790_s26, %s2350_s20 }
 0x9f5   : > { %v1593_v28 = vpop.xlane.xlu1 %1592 }
 0x9f6   : > { %v1594_v29 = vsub.f32 %v1590_v5, %v1593_v28 }
 0x9f8   : > { %v1595_v30 = vmul.f32 1.442695, %v1594_v29 }
 0x9fa   : > { %2714 = vpow2.f32 %v1595_v30 }
 0x9fd   : > { %v1705_v31 = vpop.xlane.xlu0 %1704 }
 0x9fe   : > { %v1706_v32 = vsub.f32 %v1702_v14, %v1705_v31 }
 0xa00   : > { %v1707_v33 = vmul.f32 1.442695, %v1706_v32 }
 0xa02   : > { %2716 = vpow2.f32 %v1707_v33 }
 0xa05   : > { %v1817_v34 = vpop.xlane.xlu0 %1816 }
 0xa06   : > { %v1818_v36 = vsub.f32 %v1814_v20, %v1817_v34 }
 0xa07   : > { %v2715_v37 = vpop.eup %2714 }
 0xa08   : > { %v1819_v39 = vmul.f32 1.442695, %v1818_v36  ;;  %v1597_v40 = vsel %vm783_vm2, %v2715_v37, 0.0 }
 0xa09   : > { %1598 = vadd.xlane.f32.xlu0 %v1597_v40 }
 0xa0a   : > { %2718 = vpow2.f32 %v1819_v39 }
 0xa0f   : > { %v2717_v41 = vpop.eup %2716 }
 0xa10   : > { %v1709_v42 = vsel %vm783_vm2, %v2717_v41, 0.0 }
 0xa11   : > { %1710 = vadd.xlane.f32.xlu1 %v1709_v42 }
 0xa17   : > { %v2719_v43 = vpop.eup %2718 }
 0xa18   : > { %v1821_v44 = vsel %vm783_vm2, %v2719_v43, 0.0 }
 0xa19   : > { %1822 = vadd.xlane.f32.xlu0 %v1821_v44 }
 0xa1f   : > { %v1485_v45 = vpop.xlane.xlu1 %1484 }
 0xa20   : > { %2720 = vrcp.f32 %v1485_v45 }
 0xa22   : > { %1715 = vrot.lane.b32.xlu1 %v3540_v38, %s3044_s29  ;;  %s2108_s29 = scalar_lea.sflag [#allocation4], %s3373_s19 }
 0xa23   : > { %v1491_v46 = vpop.permute.xlu1 %1490 }
 0xa24   : > { %v1496_v47 = vsel %vm849_vm4, %v1491_v46, 0 }
 0xa25   : > { %2495 = vmatpush3.bf16.msra.mxu1 %v1496_v47  ;;  %v1971_v47 = vld [vmem:[#allocation14 + $0x10] sm:$0xff] }
 0xa26   : > { %1827 = vrot.lane.b32.xlu1 %v3540_v38, %s3046_s13  ;;  %2506 = vmatprep.subr.bf16.mxu1 %v3040_v0  ;;  %s3787_s13 = sld [smem:[#allocation28_spill]] }
 0xa2c   : > { %p3792_p1 = scmp.ne.s32.totalorder %s3787_s13, 0 }
 0xa2d   : > { %v2721_v48 = vpop.eup %2720 }
 0xa2e   : > { %v1487_v49 = vmul.f32 %v2721_v48, %v2713_v26  ;;  %v1972_v48 = vld [vmem:[#allocation14 + $0x18] sm:$0xff] }
 0xa2f   : > { %1603 = vrot.lane.b32.xlu0 %v3540_v38, %s3045_s1  ;;  %s2944_s1 = scalar_lea.vmem %s2122_s23, 128 }
 0xa30   : > { %v1488_v50 = vpack.c.bf16 %v1487_v49, %v1487_v49  ;;  %v1975_v49 = vpack.c.bf16 %v1972_v48, %v1971_v47  ;;  %p2945_p9 = scmp.ne.s32.totalorder %s2122_s23, %s2944_s1  ;;  %p2952_p3 = scmp.lt.s32.totalorder %s2950_s0, %s2944_s1 }
 0xa32   : > { %2497 = vmatmul.mubr.msk.bf16.vlgmr.msra.gmra.mxu1 %vm783_vm2, %v1488_v50  ;;  %v1969_v50 = vld [vmem:[#allocation14] sm:$0xff]  ;;  %p2946_p4 = pnand %p2945_p9, %p3792_p1  ;;  %p2953_p7 = por %p2952_p3, %p2951_p2 }
 0xa33   : > { %2508 = vmatprep.mubr.msk.bf16.mxu1 %vm3041_vm0, %v3040_v0 }
 0xa34   : > { %p2947_p6 = pneg %p2946_p4 }
 0xa36   : > { %p2954_p12 = pnand %p2953_p7, %p2947_p6 }
 0xa92   : > { %v1599_v51 = vpop.xlane.xlu0 %1598 }
 0xa93   : > { %2722 = vrcp.f32 %v1599_v51  ;;  %v1970_v51 = vld [vmem:[#allocation14 + $0x8] sm:$0xff] }
 0xa9a   : > { %v1711_v52 = vpop.xlane.xlu1 %1710 }
 0xa9b   : > { %2724 = vrcp.f32 %v1711_v52  ;;  %v2026_v52 = vld [vmem:[%s3725_s14 + $0x30] sm:$0xff] }
 0xa9e   : > { %v1716_v58 = vpop.permute.xlu1 %1715 }
 0xa9f   : > { %v1721_v60 = vsel %vm849_vm4, %v1716_v58, 0  ;;  %v2022_v58 = vld [vmem:[%s3725_s14 + $0x10] sm:$0xff] }
 0xaa0   : > { %v2723_v53 = vpop.eup %2722 }
 0xaa1   : > { %v1601_v55 = vmul.f32 %v2723_v53, %v2715_v37  ;;  %v2027_v53 = vld [vmem:[%s3725_s14 + $0x38] sm:$0xff] }
 0xaa2   : > { %v1823_v54 = vpop.xlane.xlu0 %1822  ;;  %v1828_v62 = vpop.permute.xlu1 %1827 }
 0xaa3   : > { %2726 = vrcp.f32 %v1823_v54  ;;  %v1602_v38 = vpack.c.bf16 %v1601_v55, %v1601_v55  ;;  %v1833_v2 = vsel %vm849_vm4, %v1828_v62, 0  ;;  %v2024_v54 = vld [vmem:[%s3725_s14 + $0x20] sm:$0xff]  ;;  %v2032_v55 = vpack.c.bf16 %v2027_v53, %v2026_v52 }
 0xaa6   : > { %v1604_v56 = vpop.permute.xlu0 %1603 }
 0xaa7   : > { %v1609_v57 = vsel %vm849_vm4, %v1604_v56, 0  ;;  %v2025_v56 = vld [vmem:[%s3725_s14 + $0x28] sm:$0xff] }
 0xaa8   : > { %2507 = vmatpush3.bf16.msra.mxu1 %v1609_v57  ;;  %v2725_v59 = vpop.eup %2724  ;;  %v2031_v57 = vpack.c.bf16 %v2025_v56, %v2024_v54 }
 0xaa9   : > { %2518 = vmatprep.subr.bf16.mxu1 %v3040_v0  ;;  %v1713_v61 = vmul.f32 %v2725_v59, %v2717_v41 }
 0xaab   : > { %2509 = vmatmul.mubr.msk.bf16.vlgmr.msra.gmra.mxu1 %vm783_vm2, %v1602_v38  ;;  %v1714_v63 = vpack.c.bf16 %v1713_v61, %v1713_v61  ;;  %v2023_v38 = vld [vmem:[%s3725_s14 + $0x18] sm:$0xff] }
 0xaac   : > { %2519 = vmatpush3.bf16.msra.mxu1 %v1721_v60  ;;  %2520 = vmatprep.mubr.msk.bf16.mxu1 %vm3041_vm0, %v3040_v0  ;;  %v2030_v59 = vpack.c.bf16 %v2023_v38, %v2022_v58 }
 0xaad   : > { %2530 = vmatprep.subr.bf16.mxu1 %v3040_v0 }
 0xab0   : > { %v2727_v1 = vpop.eup %2726 }
 0xab1   : > { %v1825_v3 = vmul.f32 %v2727_v1, %v2719_v43  ;;  %v2343_v1 = vld [vmem:[%s3722_s11] ss:$0 sm:$0xff] }
 0xab3   : > { %2521 = vmatmul.mubr.msk.bf16.vlgmr.msra.gmra.mxu1 %vm783_vm2, %v1714_v63  ;;  %v1826_v4 = vpack.c.bf16 %v1825_v3, %v1825_v3  ;;  %v2344_v3 = vld [vmem:[%s3723_s12] ss:$0 sm:$0xff] }
 0xab4   : > { %2531 = vmatpush3.bf16.msra.mxu1 %v1833_v2  ;;  %2532 = vmatprep.mubr.msk.bf16.mxu1 %vm3041_vm0, %v3040_v0 }
 0xab5   : > { %2544 = vmatprep.subr.bf16.mxu1 %v3040_v0 }
 0xabb   : > { %2533 = vmatmul.mubr.msk.bf16.vlgmr.msra.gmra.mxu1 %vm783_vm2, %v1826_v4 }
 0xabc   : > { %2548 = vmatprep.mubr.msk.bf16.mxu1 %vm3041_vm0, %v3040_v0  ;;  %2545 = vmatpush3.bf16.msra.mxu1 %v1975_v49 }
 0xabd   : > { %2546 = vmatprep.subr.bf16.mxu1 %v3040_v0 }
 0xaf2   : > { %v1532_v5 = vpop.f32.mrf.mxu1 }
 0xaf4   : > { %v2498_v6 = vpop.f32.mrf.mxu1 }
 0xaf6   : > { %v1535_v8 = vpop.f32.mrf.mxu1 }
 0xaf7   : > { %v2021_v8 = vld [vmem:[%s3725_s14 + $0x8] sm:$0xff] }
 0xaf8   : > { %v2499_v9 = vpop.f32.mrf.mxu1 }
 0xb6b   : > { %v1645_v14 = vpop.f32.mrf.mxu1 }
 0xb6c   : > { %1876 = vrot.lane.b32.xlu0 %v1645_v14, %s3053_s9 }
 0xb6d   : > { %v2510_v15 = vpop.f32.mrf.mxu1 }
 0xb6f   : > { %v1648_v18 = vpop.f32.mrf.mxu1 }
 0xb71   : > { %v2511_v19 = vpop.f32.mrf.mxu1 }
 0xb73   : > { %v1757_v20 = vpop.f32.mrf.mxu1 }
 0xb74   : > { %1880 = vrot.lane.b32.xlu1 %v1757_v20, %s3054_s21 }
 0xb75   : > { %v2522_v21 = vpop.f32.mrf.mxu1 }
 0xb77   : > { %v1760_v22 = vpop.f32.mrf.mxu1 }
 0xb79   : > { %v2523_v23 = vpop.f32.mrf.mxu1 }
 0xb7b   : > { %v1869_v10 = vpop.f32.mrf.mxu1 }
 0xb7c   : > { %1884 = vrot.lane.b32.xlu0 %v1869_v10, %s3055_s16  ;;  %s3789_s16 = sld [smem:[#allocation39_spill]] }
 0xb7d   : > { %v2534_v24 = vpop.f32.mrf.mxu1 }
 0xb7f   : > { %v1872_v25 = vpop.f32.mrf.mxu1 }
 0xb81   : > { %v2535_v26 = vpop.f32.mrf.mxu1 }
 0xbde   : > { %v1877_v27 = vpop.permute.xlu0 %1876 }
 0xbdf   : > { %v1887_v29 = vsel %vm783_vm2, %v1532_v5, %v1877_v27 }
 0xbe6   : > { %v1881_v28 = vpop.permute.xlu1 %1880 }
 0xbe7   : > { %v1888_v30 = vsel %vm1242_vm5, %v1887_v29, %v1881_v28 }
 0xbee   : > { %v1885_v31 = vpop.permute.xlu0 %1884 }
 0xbef   : > { %v1889_v32 = vsel %vm1244_vm6, %v1888_v30, %v1885_v31  ;;  %v2347_v30 = vld [vmem:[%s3788_s30] ss:$0 sm:$0xff] }
 0xbf0   : > { %v1894_v33 = vpack.c.bf16 %v1889_v32, %v1889_v32  ;;  %v2348_v32 = vld [vmem:[%s3789_s16] ss:$0 sm:$0xff] }
 0xbf2   : > { %2541 = vmatmul.mubr.msk.bf16.vlgmr.msra.gmra.mxu0 %vm734_vm1, %v1894_v33 }
 0xbf3   : > { %2560 = vmatprep.mubr.msk.bf16.mxu0 %vm3041_vm0, %v3040_v0  ;;  %2553 = vmatpush3.bf16.msra.mxu0 %v2032_v55 }
 0xbf4   : > { %2554 = vmatprep.subr.bf16.mxu0 %v3040_v0 }
 0xbf7   : > { %2555 = vmatpush3.bf16.msra.mxu0 %v2031_v57 }
 0xbf8   : > { %2556 = vmatprep.subr.bf16.mxu0 %v3040_v0 }
 0xbfb   : > { %2557 = vmatpush3.bf16.msra.mxu0 %v2030_v59 }
 0xbfc   : > { %2558 = vmatprep.subr.bf16.mxu0 %v3040_v0  ;;  %v2020_v0 = vld [vmem:[%s3725_s14] sm:$0xff] }
 0xbfd   : > { %v2029_v9 = vpack.c.bf16 %v2021_v8, %v2020_v0 }
 0xbff   : > { %2559 = vmatpush3.bf16.msra.mxu0 %v2029_v9 }
 0xcb2   : > { %v1934_v34 = vpop.f32.mrf.mxu0 }
 0xcb3   : > { %v1935_v36 = vadd.f32 %v1934_v34, %v3533_v35  ;;  %v1974_v35 = vpack.c.bf16 %v1970_v51, %v1969_v50 }
 0xcb4   : > { %v2542_v37 = vpop.f32.mrf.mxu0 }
 0xcb5   : > { %v1942_v39 = vsel %vm734_vm1, %v1935_v36, 0.0  ;;  %2547 = vmatpush3.bf16.msra.mxu1 %v1974_v35 }
 0xcb6   : > { %1943 = vadd.xlane.f32.xlu1 %v1942_v39  ;;  %v1937_v40 = vpop.f32.mrf.mxu0 }
 0xcb8   : > { %v2543_v41 = vpop.f32.mrf.mxu0 }
 0xd3f   : > { %v1944_v42 = vpop.xlane.xlu1 %1943 }
 0xd40   : > { %v1945_v43 = vmul.f32 0.03125, %v1944_v42 }
 0xd42   : > { %v1946_v44 = vsub.f32 %v1935_v36, %v1945_v43 }
 0xd44   : > { %v1947_v45 = vmul.f32 %v1946_v44, %v1946_v44 }
 0xd46   : > { %v1948_v46 = vsel %vm734_vm1, %v1947_v45, 0.0 }
 0xd47   : > { %1949 = vadd.xlane.f32.xlu0 %v1948_v46 }
 0xdd0   : > { %v1950_v60 = vpop.xlane.xlu0 %1949 }
 0xdd1   : > { %v1951_v61 = vmul.f32 0.03125, %v1950_v60 }
 0xdd3   : > { %v1952_v62 = vadd.f32 1e-05, %v1951_v61 }
 0xdd5   : > { %2728 = vrsqrt.f32 %v1952_v62 }
 0xde2   : > { %v2729_v63 = vpop.eup %2728 }
 0xde3   : > { %v1954_v2 = vmul.f32 %v2729_v63, %v1946_v44 }
 0xde5   : > { %v1961_v4 = vmul.f32 %v2343_v1, %v1954_v2 }
 0xde7   : > { %v1968_v5 = vadd.f32 %v2344_v3, %v1961_v4 }
 0xde9   : > { %v1973_v6 = vpack.c.bf16 %v1968_v5, %v1968_v5 }
 0xdeb   : > { %2549 = vmatmul.mubr.msk.bf16.vlgmr.msra.gmra.mxu1 %vm734_vm1, %v1973_v6 }
 0xeab   : > { %v2013_v11 = vpop.f32.mrf.mxu1 }
 0xeac   : > { %v2019_v12 = vmax.f32 %v2013_v11, 0.0 }
 0xead   : > { %v2550_v13 = vpop.f32.mrf.mxu1 }
 0xeae   : > { %v2028_v14 = vpack.c.bf16 %v2019_v12, %v2019_v12 }
 0xeaf   : > { %v2016_v15 = vpop.f32.mrf.mxu1 }
 0xeb0   : > { %2561 = vmatmul.mubr.msk.bf16.vlgmr.msra.gmra.mxu0 %vm2033_vm8, %v2028_v14 }
 0xeb1   : > { %v2551_v16 = vpop.f32.mrf.mxu1 }
 0xf70   : > { %v2071_v17 = vpop.f32.mrf.mxu0 }
 0xf71   : > { %v2072_v7 = vadd.f32 %v2071_v17, %v1968_v5 }
 0xf72   : > { %v2562_v18 = vpop.f32.mrf.mxu0 }
 0xf73   : > { %v2079_v19 = vsel %vm734_vm1, %v2072_v7, 0.0 }
 0xf74   : > { %2080 = vadd.xlane.f32.xlu0 %v2079_v19  ;;  %v2074_v20 = vpop.f32.mrf.mxu0 }
 0xf76   : > { %v2563_v21 = vpop.f32.mrf.mxu0 }
 0xffd   : > { %v2081_v22 = vpop.xlane.xlu0 %2080 }
 0xffe   : > { %v2082_v23 = vmul.f32 0.03125, %v2081_v22 }
0x1000   : > { %v2083_v10 = vsub.f32 %v2072_v7, %v2082_v23 }
0x1002   : > { %v2084_v24 = vmul.f32 %v2083_v10, %v2083_v10 }
0x1004   : > { %v2085_v25 = vsel %vm734_vm1, %v2084_v24, 0.0 }
0x1005   : > { %2086 = vadd.xlane.f32.xlu1 %v2085_v25 }
0x108e   : > { %v2087_v26 = vpop.xlane.xlu1 %2086 }
0x108f   : > { %v2088_v27 = vmul.f32 0.03125, %v2087_v26 }
0x1091   : > { %v2089_v28 = vadd.f32 1e-05, %v2088_v27 }
0x1093   : > { %2730 = vrsqrt.f32 %v2089_v28 }
0x10a0   : > { %v2731_v29 = vpop.eup %2730 }
0x10a1   : > { %v2091_v31 = vmul.f32 %v2731_v29, %v2083_v10 }
0x10a3   : > { %v2098_v33 = vmul.f32 %v2347_v30, %v2091_v31 }
0x10a5   : > { %v2105_v34 = vadd.f32 %v2348_v32, %v2098_v33 }
0x10a7   : > { %2106 = vst.msk [vmem:[%s713_s15] sm:$0xff] %vm734_vm1, %v2105_v34 }
0x10a8   : > { %2957 = shalt.err (!%p2954_p12)
}
0x10a9   : > { %s2958_s4 = scalar_lea.hbm %s2119_s24, 128  ;;  %s2962_s9 = scalar_lea.hbm %s3791_s17, 256 }
0x10aa   : > { %p2959_p0 = scmp.ne.s32.totalorder %s2119_s24, %s2958_s4  ;;  %p2963_p11 = scmp.lt.s32.totalorder %s2119_s24, %s3791_s17 }
0x10ab   : > { %p2964_p13 = scmp.lt.s32.totalorder %s2962_s9, %s2958_s4 }
0x10ac   : > { %p2960_p8 = pnand %p2959_p0, %p3792_p1 }
0x10ad   : > { %p2965_p5 = por %p2964_p13, %p2963_p11 }
0x10ae   : > { %p2961_p10 = pneg %p2960_p8 }
0x10b0   : > { %p2966_p9 = pnand %p2965_p5, %p2961_p10 }
0x10b2   : > { %2969 = shalt.err (!%p2966_p9)
}
0x10b3   : > { %2592 = dma.vmem_to_hbm [thread:$0]  (%p3792_p1), %s2122_s23, 128, %s2119_s24, %s2108_s29  }
0x10b4 PF: > { %s3793_s20 = sld [smem:[#allocation24_spill]]  ;;  %p3796_p6 = scmp.ge.s32.totalorder %s3028_s27, 2 }
0x10b5   : > { %s3794_s15 = sld [smem:[#allocation29_spill]] }
0x10ba   : > { %s2133_s10 = sand.u32 1, %s3793_s20  }
0x10bb   : > { %p3795_p4 = scmp.ne.s32.totalorder %s3794_s15, 0  ;;  %s2134_s28 = scalar_lea.sflag [#allocation4], %s2133_s10 }
0x10bd   : > { %p2621_p2 = pnand %p3796_p6, %p3795_p4 }
0x10bf   : > { %p2622_p3 = pneg %p2621_p2 }
0x10c1   : > { %3011 = dma.done.wait (%p2622_p3), %s2134_s28, 128  }
0x10c2   : > { %3013 = vsyncadd (%p2622_p3), %s2134_s28, 4294967168  ;;  %s3797_s27 = sld [smem:[#allocation26_spill]]  ;;  %s3800_s24 = smov %s3020_s25 }
0x10c3   : > { %s3798_s26 = sld [smem:[#allocation25_spill]] }
0x10c4   : > { %s3799_s1 = sld [smem:[#allocation27_spill]] }
0x10c8   : > { %p36_p7 = scmp.ge.s32.totalorder %s3797_s27, 4  }
0x10c9   : > { %s3801_s25 = smov %s3798_s26 }
0x10ca   : > { %s3802_s26 = smov %s3799_s1  ;;  %38 = sbr.rel (!%p36_p7) target bundleno = 22 (0x16), region = 176 }
0x10cf   :  { %2139 = vsyncpa [#allocation3], 1 }
0x10d0   :  { %2141 = vsyncpa [#allocation3 + $0x1], 1 }
0x10d1   :  { %2142 = vsyncpa [#allocation6], 1 }
0x10d2   :  { %2144 = vsyncpa [#allocation6 + $0x1], 1 }
0x10d3   :  { %2145 = vsyncpa [#allocation9], 1 }
0x10d4   :  { %2146 = vsyncpa [#allocation12], 1 }
0x10d5   :  { %2147 = vsyncpa [#allocation15], 1 }
0x10d6   :  { %2148 = vsyncpa [#allocation4], 1 }
0x10d7   :  { %2150 = vsyncpa [#allocation4 + $0x1], 1 }

</bundles_post_ra>
